<compile_context>
chip_gen: v7x
topology: tpu7x:2x2x1
jax: 0.10.0
libtpu: 0.0.40
codegen_flags: <defaults>
</compile_context>

<pallas_src>
import functools
import math

import numpy as np
import jax
import jax.numpy as jnp
from jax.experimental import pallas as pl
from jax.experimental.pallas import tpu as pltpu

F32 = jnp.float32
BF16 = jnp.bfloat16
EPS = 1e-5
NEG_SLOPE = 0.2
NEG_INF = -1e30
POOL_RATIO = 0.8


def _leaky(x):
    return jnp.where(x > 0, x, NEG_SLOPE * x)


def _norm_rows(x):
    # per-channel normalization over the row axis (BatchNorm/InstanceNorm batch stats)
    mean = jnp.mean(x, axis=0, keepdims=True)
    var = jnp.mean((x - mean) ** 2, axis=0, keepdims=True)
    return (x - mean) * jax.lax.rsqrt(var + EPS)


def _vmem():
    return pl.BlockSpec(memory_space=pltpu.MemorySpace.VMEM)


# ---------------- K1: row-tiled node linear front-end (pre-BatchNorm) ----------------

def _node_linear_kernel(x_app_ref, x_lbl_ref, wx_ref, wl_ref, b_ref, o_ref):
    # two bf16 MXU matmuls with f32 accumulation, one lane-dense concatenated store
    f = jnp.dot(x_app_ref[...], wx_ref[...], preferred_element_type=F32)
    l = jnp.dot(x_lbl_ref[...], wl_ref[...], preferred_element_type=F32)
    o_ref[...] = jnp.concatenate([f, l], axis=1) + b_ref[...]


def node_linear(x_app, x_lbl, w_x, w_l, b_cat):
    n = x_app.shape[0]
    d_app, d_lbl = x_app.shape[1], x_lbl.shape[1]
    d_fx, d_fl = w_x.shape[1], w_l.shape[1]
    dout = d_fx + d_fl
    # single block at test scale; 256-row tiles (pipelined, TC-shardable) at defaults
    tm = n if n <= 256 else 256
    # TODO(synk): also tile the K=4096 contraction at module defaults.
    return pl.pallas_call(
        _node_linear_kernel,
        out_shape=jax.ShapeDtypeStruct((n, dout), F32),
        grid=(pl.cdiv(n, tm),),
        in_specs=[
            pl.BlockSpec((tm, d_app), lambda i: (i, 0)),
            pl.BlockSpec((tm, d_lbl), lambda i: (i, 0)),
            pl.BlockSpec((d_app, d_fx), lambda i: (0, 0)),
            pl.BlockSpec((d_lbl, d_fl), lambda i: (0, 0)),
            pl.BlockSpec((1, dout), lambda i: (0, 0)),
        ],
        out_specs=pl.BlockSpec((tm, dout), lambda i: (i, 0)),
        compiler_params=pltpu.CompilerParams(dimension_semantics=("parallel",)),
    )(x_app, x_lbl, w_x, w_l, b_cat)


# ------- K2: fused tail (BN -> dual GCN -> TopK pool -> max pool -> GATs -> head) -------

def _fused_tail_kernel(e_half, num_frames, num_classes,
                       slab_ref, a_sp_ref, a_tm_ref, bcol_ref, brow_ref,
                       img_ref, vmask_ref, w_g_ref, w_sg_ref, w_im_ref,
                       w_img_ref, w1_ref, w2_ref, vec_ref,
                       logits_ref, probs_ref, g_scr):
    E = 2 * e_half
    din = 2 * E + e_half
    vec = vec_ref[...]                                                   # packed [1,C] params

    # ---- BatchNorm1d(train) + LeakyReLU on the node-embedding slab (both branches) ----
    gamma, beta = vec[0:1, :din], vec[1:2, :din]
    xc = _leaky(_norm_rows(slab_ref[...]) * gamma + beta)                # [N, din]

    # ---- dual GCNConv (one fused XW matmul) + InstanceNorm + LeakyReLU ----
    xw = jnp.dot(xc.astype(BF16), w_g_ref[...], preferred_element_type=F32)        # [N, E]
    h_sp = jnp.dot(a_sp_ref[...], xw[:, :e_half].astype(BF16),
                   preferred_element_type=F32)                                     # [N, E/2]
    h_tm = jnp.dot(a_tm_ref[...], xw[:, e_half:].astype(BF16),
                   preferred_element_type=F32)                                     # [N, E/2]
    h = jnp.concatenate([h_sp, h_tm], axis=1) + vec[2:3, :E]                       # [N, E]
    n_embed = _leaky(_norm_rows(h))                                                # [N, E]

    # ---- TopKPooling score + per-graph top-k as a static-shape rank test ----
    pool_w = vec[3:4, :E]                                                          # [1, E]
    r_col = jax.lax.dot_general(n_embed, pool_w, (((1,), (1,)), ((), ())),
                                preferred_element_type=F32)                        # [N, 1]
    # exact lane-oriented copy of r_col (multiply by 1.0) -> antisymmetric comparison
    r_row = jax.lax.dot_general(jnp.ones((1, 1), F32), r_col,
                                (((1,), (1,)), ((), ())),
                                preferred_element_type=F32)                        # [1, N]
    inv_wn = jax.lax.rsqrt(jnp.sum(pool_w * pool_w, keepdims=True))                # [1, 1]
    score = jnp.tanh(r_col * inv_wn)                                               # [N, 1]

    n = r_col.shape[0]
    bcol = bcol_ref[...]                                                           # [N, 1] i32
    brow = brow_ref[...]                                                           # [1, N] i32
    same = bcol == brow                                                            # [N, N]
    row_i = jax.lax.broadcasted_iota(jnp.int32, (n, n), 0)
    col_j = jax.lax.broadcasted_iota(jnp.int32, (n, n), 1)
    beats = (r_row > r_col) | ((r_row == r_col) & (col_j < row_i))     # node j beats node i
    rank = jnp.sum(jnp.where(beats & same, 1.0, 0.0), axis=1, keepdims=True)       # [N, 1]
    count = jnp.sum(jnp.where(same, 1.0, 0.0), axis=1, keepdims=True)              # [N, 1]
    sel = rank < jnp.ceil(POOL_RATIO * count)                                      # [N, 1]
    pooled = n_embed * score                                                       # [N, E]

    # ---- global_max_pool: one frame row at a time (no [F, N, E] broadcast) ----
    @pl.loop(0, num_frames)
    def _(f):
        keep = jnp.logical_and(bcol == f, sel)                                     # [N, 1]
        vals = jnp.where(keep, pooled, NEG_INF)
        row = jnp.max(vals, axis=0, keepdims=True)                                 # [1, E]
        # empty-frame guard: no kept nodes -> 0 instead of -1e30
        g_scr[pl.ds(f, 1), :] = jnp.where(row > 0.5 * NEG_INF, row, 0.0)

    g_embed = g_scr[...]                                                           # [F, E]

    # ---- frame-level graph: img_fc + dual GATv2 (shared mask) + InstanceNorm ----
    mask = vmask_ref[...] > 0.5                                                    # [F, F]
    img_emb = jnp.dot(img_ref[...], w_img_ref[...],
                      preferred_element_type=F32) + vec[4:5, :2 * E]               # [F, 2E]

    def gatv2(xin, w_ref, r0):
        bl = vec[r0:r0 + 1, :e_half]
        br = vec[r0 + 1:r0 + 2, :e_half]
        att = vec[r0 + 2:r0 + 3, :e_half]
        bias = vec[r0 + 3:r0 + 4, :e_half]
        # W_l and W_r concatenated host-side -> one MXU matmul per branch
        s = jnp.dot(xin.astype(BF16), w_ref[...], preferred_element_type=F32)      # [F, E]
        sl = s[:, :e_half] + bl            # W_l x_j  (source / message)
        sr = s[:, e_half:] + br            # W_r x_i  (target)
        pair = _leaky(sr[:, None, :] + sl[None, :, :])                             # [F, F, E/2]
        e = jnp.sum(pair * att[None, :, :], axis=-1)                               # [F, F]
        e = jnp.where(mask, e, NEG_INF)
        e = e - jnp.max(e, axis=-1, keepdims=True)
        p = jnp.where(mask, jnp.exp(e), 0.0)
        alpha = p * pl.reciprocal(jnp.sum(p, axis=-1, keepdims=True), approx=False)
        return jnp.dot(alpha, sl, preferred_element_type=F32) + bias

    h_sg = gatv2(g_embed, w_sg_ref, 5)                                             # [F, E/2]
    h_im = gatv2(img_emb, w_im_ref, 9)                                             # [F, E/2]
    frame_embed = jnp.concatenate([_leaky(_norm_rows(h_sg)),
                                   _leaky(_norm_rows(h_im))], axis=1)              # [F, E]

    # ---- classifier fc1 + LeakyReLU + fc2 + softmax ----
    hid = _leaky(jnp.dot(frame_embed, w1_ref[...],
                         preferred_element_type=F32) + vec[13:14, :e_half])
    logits = jnp.dot(hid, w2_ref[...],
                     preferred_element_type=F32) + vec[14:15, :num_classes]
    logits_ref[...] = logits
    m = jnp.max(logits, axis=-1, keepdims=True)
    ex = jnp.exp(logits - m)
    probs_ref[...] = ex * pl.reciprocal(jnp.sum(ex, axis=-1, keepdims=True), approx=False)


def fused_tail(slab, a_sp, a_tm, bcol, brow, img_bf16, vmask,
               w_g, w_sg, w_im, w_img, w1, w2, vecs,
               num_frames, e_half, num_classes):
    E = 2 * e_half
    return pl.pallas_call(
        functools.partial(_fused_tail_kernel, e_half, num_frames, num_classes),
        out_shape=(jax.ShapeDtypeStruct((num_frames, num_classes), F32),
                   jax.ShapeDtypeStruct((num_frames, num_classes), F32)),
        in_specs=[_vmem()] * 14,
        out_specs=(_vmem(), _vmem()),
        scratch_shapes=[pltpu.VMEM((num_frames, E), F32)],
    )(slab, a_sp, a_tm, bcol, brow, img_bf16, vmask,
      w_g, w_sg, w_im, w_img, w1, w2, vecs)


# ------------------------------- graph glue (jnp, jit-able) -------------------------------
# TODO(synk): at real scale replace these dense O(N^2) builds + dense GCN with a
#             PrefetchScalarGridSpec gather/scatter GCN (edge lists in SMEM).

def gcn_norm_dense(edge_index, edge_weight, num_nodes):
    """Dense D^-1/2 (A + I) D^-1/2, weighted, matching PyG GCNConv defaults."""
    row, col = edge_index[0], edge_index[1]
    loop = jnp.arange(num_nodes, dtype=row.dtype)
    row = jnp.concatenate([row, loop])
    col = jnp.concatenate([col, loop])
    w = jnp.concatenate([edge_weight.astype(F32), jnp.ones((num_nodes,), F32)])
    deg = jnp.zeros((num_nodes,), F32).at[col].add(w)
    dinv = jnp.where(deg > 0, jax.lax.rsqrt(deg), 0.0)
    norm = dinv[row] * w * dinv[col]
    return jnp.zeros((num_nodes, num_nodes), F32).at[col, row].add(norm)


def adj_mask_self_loops(edge_index, num_nodes):
    """Dense incoming-edge mask with self loops: mask[i, j]=1 iff edge j->i (or i==j)."""
    row, col = edge_index[0], edge_index[1]
    m = jnp.zeros((num_nodes, num_nodes), F32)
    m = m.at[col, row].set(1.0)
    diag = jnp.arange(num_nodes)
    return m.at[diag, diag].set(1.0)


def _pack_vecs(p, E, e_half, din, num_classes):
    """Pack all tiny [1, C] parameters into one [15, din] slab (one DMA)."""
    def pad(v):
        return jnp.pad(v, ((0, 0), (0, din - v.shape[1])))
    rows = [
        pad(jnp.concatenate([p["x_bn_g"], p["obj_bn_g"]], axis=1)),   # 0  BN gamma (cat)
        pad(jnp.concatenate([p["x_bn_b"], p["obj_bn_b"]], axis=1)),   # 1  BN beta  (cat)
        pad(jnp.concatenate([p["gc1s_b"], p["gc1t_b"]], axis=1)),     # 2  GCN bias (cat)
        pad(p["pool_w"]),                                             # 3  TopK weight
        pad(p["img_fc_b"]),                                           # 4  img_fc bias
        pad(p["gat_sg"][1]), pad(p["gat_sg"][3]),                     # 5,6  sg  bl, br
        pad(p["gat_sg"][4]), pad(p["gat_sg"][5]),                     # 7,8  sg  att, bias
        pad(p["gat_i3d"][1]), pad(p["gat_i3d"][3]),                   # 9,10 i3d bl, br
        pad(p["gat_i3d"][4]), pad(p["gat_i3d"][5]),                   # 11,12 i3d att, bias
        pad(p["fc1_b"]),                                              # 13 fc1 bias
        pad(p["fc2_b"]),                                              # 14 fc2 bias
    ]
    return jnp.concatenate(rows, axis=0)


# ----------------------------- parameter init ------------------------------

def init_params(key, input_dim, embedding_dim, img_feat_dim, num_classes):
    E = embedding_dim
    ks = iter(jax.random.split(key, 40))

    def dense(din, dout):
        return jax.random.normal(next(ks), (din, dout), F32) / math.sqrt(din)

    def small(dout):
        return jax.random.normal(next(ks), (1, dout), F32) * 0.01

    p = {}
    p["x_fc_w"], p["x_fc_b"] = dense(input_dim, 2 * E), small(2 * E)
    p["x_bn_g"], p["x_bn_b"] = jnp.ones((1, 2 * E), F32), jnp.zeros((1, 2 * E), F32)
    p["obj_fc_w"], p["obj_fc_b"] = dense(300, E // 2), small(E // 2)
    p["obj_bn_g"], p["obj_bn_b"] = jnp.ones((1, E // 2), F32), jnp.zeros((1, E // 2), F32)
    din_g = 2 * E + E // 2
    p["gc1s_w"], p["gc1s_b"] = dense(din_g, E // 2), jnp.zeros((1, E // 2), F32)
    p["gc1t_w"], p["gc1t_b"] = dense(din_g, E // 2), jnp.zeros((1, E // 2), F32)
    p["pool_w"] = jax.random.normal(next(ks), (1, E), F32) / math.sqrt(E)
    p["img_fc_w"], p["img_fc_b"] = dense(img_feat_dim, 2 * E), small(2 * E)

    def gat(din, dout):
        return (dense(din, dout), jnp.zeros((1, dout), F32),
                dense(din, dout), jnp.zeros((1, dout), F32),
                jax.random.normal(next(ks), (1, dout), F32) / math.sqrt(dout),
                jnp.zeros((1, dout), F32))

    p["gat_sg"] = gat(E, E // 2)
    p["gat_i3d"] = gat(2 * E, E // 2)
    p["fc1_w"], p["fc1_b"] = dense(E, E // 2), small(E // 2)
    p["fc2_w"], p["fc2_b"] = dense(E // 2, num_classes), small(num_classes)
    return p


# ------------------------------- forward pass ------------------------------

def space_temp_gog_forward(params, x, edge_index, img_feat, video_adj_list,
                           edge_embeddings, temporal_adj_list, temporal_edge_w,
                           batch_vec, input_dim, num_frames):
    n = x.shape[0]
    e_half = params["gc1s_w"].shape[1]            # embedding_dim // 2
    E = 2 * e_half
    din = 2 * E + e_half
    num_classes = params["fc2_w"].shape[1]

    # K1: object appearance + label linears (host-side split; bf16 MXU operands)
    x_app = x[:, :input_dim].astype(BF16)
    x_lbl = x[:, input_dim:].astype(BF16)
    b_cat = jnp.concatenate([params["x_fc_b"], params["obj_fc_b"]], axis=1)
    slab = node_linear(x_app, x_lbl,
                       params["x_fc_w"].astype(BF16),
                       params["obj_fc_w"].astype(BF16), b_cat)            # [N, din] f32

    # dense normalized adjacencies (spatial uses last column of edge_embeddings), bf16
    a_sp = gcn_norm_dense(edge_index, edge_embeddings[:, -1], n).astype(BF16)
    a_tm = gcn_norm_dense(temporal_adj_list, temporal_edge_w, n).astype(BF16)
    vmask = adj_mask_self_loops(video_adj_list, num_frames)

    bcol = batch_vec.astype(jnp.int32).reshape(n, 1)
    brow = batch_vec.astype(jnp.int32).reshape(1, n)

    # fused / packed weights for the tail kernel
    w_g = jnp.concatenate([params["gc1s_w"], params["gc1t_w"]], axis=1).astype(BF16)
    w_sg = jnp.concatenate([params["gat_sg"][0], params["gat_sg"][2]], axis=1).astype(BF16)
    w_im = jnp.concatenate([params["gat_i3d"][0], params["gat_i3d"][2]], axis=1).astype(BF16)
    w_img = params["img_fc_w"].astype(BF16)
    vecs = _pack_vecs(params, E, e_half, din, num_classes)

    # K2: everything else in one launch (BN -> GCNs -> TopK -> max pool -> GATs -> head)
    logits, probs = fused_tail(slab, a_sp, a_tm, bcol, brow,
                               img_feat.astype(BF16), vmask,
                               w_g, w_sg, w_im, w_img,
                               params["fc1_w"], params["fc2_w"], vecs,
                               num_frames, e_half, num_classes)
    return logits, probs


forward_jit = jax.jit(space_temp_gog_forward, static_argnums=(9, 10))


# ----------------------------------- main -----------------------------------

if __name__ == "__main__":
    INPUT_DIM = 128        # (module default 4096; small for test)
    LABEL_DIM = 300        # hardcoded in the module (obj_l_fc)
    EMBED_DIM = 32         # (module default 128)
    IMG_DIM = 64           # (module default 2048)
    NUM_CLASSES = 2
    NUM_FRAMES = 8
    OBJ_PER_FRAME = 5
    N_OBJ = NUM_FRAMES * OBJ_PER_FRAME

    key = jax.random.PRNGKey(0)
    k = jax.random.split(key, 4)
    x = jax.random.normal(k[0], (N_OBJ, INPUT_DIM + LABEL_DIM), F32)
    img_feat = jax.random.normal(k[1], (NUM_FRAMES, IMG_DIM), F32)

    # spatial edges: ring within each frame (both directions)
    src, dst = [], []
    for f in range(NUM_FRAMES):
        base = f * OBJ_PER_FRAME
        for j in range(OBJ_PER_FRAME):
            a = base + j
            b = base + (j + 1) % OBJ_PER_FRAME
            src += [a, b]
            dst += [b, a]
    edge_index = jnp.asarray(np.stack([src, dst]), jnp.int32)
    edge_embeddings = jax.random.uniform(k[2], (edge_index.shape[1], 4), F32,
                                         minval=0.1, maxval=1.0)

    # temporal edges: same object slot across consecutive frames (both directions)
    src, dst = [], []
    for f in range(NUM_FRAMES - 1):
        for j in range(OBJ_PER_FRAME):
            a = f * OBJ_PER_FRAME + j
            b = (f + 1) * OBJ_PER_FRAME + j
            src += [a, b]
            dst += [b, a]
    temporal_adj_list = jnp.asarray(np.stack([src, dst]), jnp.int32)
    temporal_edge_w = jax.random.uniform(k[3], (temporal_adj_list.shape[1],), F32,
                                         minval=0.1, maxval=1.0)

    # frame-level graph: chain over frames (both directions)
    src = list(range(NUM_FRAMES - 1)) + list(range(1, NUM_FRAMES))
    dst = list(range(1, NUM_FRAMES)) + list(range(NUM_FRAMES - 1))
    video_adj_list = jnp.asarray(np.stack([src, dst]), jnp.int32)

    batch_vec = jnp.asarray(np.repeat(np.arange(NUM_FRAMES), OBJ_PER_FRAME), jnp.int32)

    params = init_params(jax.random.PRNGKey(42), INPUT_DIM, EMBED_DIM, IMG_DIM, NUM_CLASSES)

    logits, probs = forward_jit(
        params, x, edge_index, img_feat, video_adj_list, edge_embeddings,
        temporal_adj_list, temporal_edge_w, batch_vec, INPUT_DIM, NUM_FRAMES)
    jax.block_until_ready((logits, probs))

    logits_np = np.asarray(logits)
    probs_np = np.asarray(probs)
    assert logits_np.shape == (NUM_FRAMES, NUM_CLASSES)
    assert probs_np.shape == (NUM_FRAMES, NUM_CLASSES)
    assert np.isfinite(logits_np).all() and np.isfinite(probs_np).all()
    assert np.allclose(probs_np.sum(-1), 1.0, atol=1e-5)
    print("KERNEL_OK")
</pallas_src>

<mosaic_0001>
module attributes {stable_mosaic.version = 11 : i64} {
  func.func @_node_linear_kernel(%arg0: i32, %arg1: memref<40x128xbf16, #tpu.memory_space<vmem>>, %arg2: memref<40x300xbf16, #tpu.memory_space<vmem>>, %arg3: memref<128x64xbf16, #tpu.memory_space<vmem>>, %arg4: memref<300x16xbf16, #tpu.memory_space<vmem>>, %arg5: memref<1x80xf32, #tpu.memory_space<vmem>>, %arg6: memref<40x80xf32, #tpu.memory_space<vmem>>) attributes {dimension_semantics = [#tpu.dimension_semantics<parallel>], iteration_bounds = array<i64: 1>, scalar_prefetch = 0 : i64, scratch_operands = 0 : i64, tpu.core_type = #tpu.core_type<tc>, window_params = [{transform_indices = @transform_0, window_bounds = array<i64: 40, 128>}, {transform_indices = @transform_1, window_bounds = array<i64: 40, 300>}, {pipeline_mode = #tpu.pipeline_mode<synchronous>, transform_indices = @transform_2, window_bounds = array<i64: 128, 64>}, {pipeline_mode = #tpu.pipeline_mode<synchronous>, transform_indices = @transform_3, window_bounds = array<i64: 300, 16>}, {pipeline_mode = #tpu.pipeline_mode<synchronous>, transform_indices = @transform_4, window_bounds = array<i64: 1, 80>}, {transform_indices = @transform_5, window_bounds = array<i64: 40, 80>}]} {
    %c0 = arith.constant 0 : index
    %c0_0 = arith.constant 0 : index
    %0 = vector.load %arg1[%c0, %c0_0] : memref<40x128xbf16, #tpu.memory_space<vmem>>, vector<40x128xbf16>
    %c0_1 = arith.constant 0 : index
    %c0_2 = arith.constant 0 : index
    %1 = vector.load %arg3[%c0_1, %c0_2] : memref<128x64xbf16, #tpu.memory_space<vmem>>, vector<128x64xbf16>
    %cst = arith.constant dense<0.000000e+00> : vector<40x64xf32>
    %2 = tpu.matmul %0, %1, %cst {dimension_numbers = #tpu.dot_dimension_numbers<[1], [0], [0], [1], [0, 0, 1, 1], [], []>} : vector<40x128xbf16>, vector<128x64xbf16>, vector<40x64xf32> -> vector<40x64xf32>
    %c0_3 = arith.constant 0 : index
    %c0_4 = arith.constant 0 : index
    %3 = vector.load %arg2[%c0_3, %c0_4] : memref<40x300xbf16, #tpu.memory_space<vmem>>, vector<40x300xbf16>
    %c0_5 = arith.constant 0 : index
    %c0_6 = arith.constant 0 : index
    %4 = vector.load %arg4[%c0_5, %c0_6] : memref<300x16xbf16, #tpu.memory_space<vmem>>, vector<300x16xbf16>
    %cst_7 = arith.constant dense<0.000000e+00> : vector<40x16xf32>
    %5 = tpu.matmul %3, %4, %cst_7 {dimension_numbers = #tpu.dot_dimension_numbers<[1], [0], [0], [1], [0, 0, 1, 1], [], []>} : vector<40x300xbf16>, vector<300x16xbf16>, vector<40x16xf32> -> vector<40x16xf32>
    %6 = tpu.concatenate %2, %5 in 1 : vector<40x64xf32>, vector<40x16xf32> -> vector<40x80xf32>
    %c0_8 = arith.constant 0 : index
    %c0_9 = arith.constant 0 : index
    %7 = vector.load %arg5[%c0_8, %c0_9] : memref<1x80xf32, #tpu.memory_space<vmem>>, vector<1x80xf32>
    %8 = vector.broadcast %7 : vector<1x80xf32> to vector<40x80xf32>
    %9 = arith.addf %6, %8 : vector<40x80xf32>
    %c0_10 = arith.constant 0 : index
    %c0_11 = arith.constant 0 : index
    %10 = vector.load %arg6[%c0_10, %c0_11] : memref<40x80xf32, #tpu.memory_space<vmem>>, vector<40x80xf32>
    tpu.vector_store %arg6[%c0_10, %c0_11], %9 {strides = array<i32>} : memref<40x80xf32, #tpu.memory_space<vmem>>, vector<40x80xf32>,
    return
  }
  func.func @transform_0(%arg0: i32) -> (i32, i32) {
    %c0_i32 = arith.constant 0 : i32
    %c0_i32_0 = arith.constant 0 : i32
    return %arg0, %c0_i32 : i32, i32
  }
  func.func @transform_1(%arg0: i32) -> (i32, i32) {
    %c0_i32 = arith.constant 0 : i32
    %c0_i32_0 = arith.constant 0 : i32
    return %arg0, %c0_i32 : i32, i32
  }
  func.func @transform_2(%arg0: i32) -> (i32, i32) {
    %c0_i32 = arith.constant 0 : i32
    %c0_i32_0 = arith.constant 0 : i32
    %c0_i32_1 = arith.constant 0 : i32
    return %c0_i32, %c0_i32_0 : i32, i32
  }
  func.func @transform_3(%arg0: i32) -> (i32, i32) {
    %c0_i32 = arith.constant 0 : i32
    %c0_i32_0 = arith.constant 0 : i32
    %c0_i32_1 = arith.constant 0 : i32
    return %c0_i32, %c0_i32_0 : i32, i32
  }
  func.func @transform_4(%arg0: i32) -> (i32, i32) {
    %c0_i32 = arith.constant 0 : i32
    %c0_i32_0 = arith.constant 0 : i32
    %c0_i32_1 = arith.constant 0 : i32
    return %c0_i32, %c0_i32_0 : i32, i32
  }
  func.func @transform_5(%arg0: i32) -> (i32, i32) {
    %c0_i32 = arith.constant 0 : i32
    %c0_i32_0 = arith.constant 0 : i32
    return %arg0, %c0_i32 : i32, i32
  }
}

module attributes {stable_mosaic.version = 11 : i64} {
  func.func @_fused_tail_kernel(%arg0: memref<40x80xf32, #tpu.memory_space<vmem>>, %arg1: memref<40x40xbf16, #tpu.memory_space<vmem>>, %arg2: memref<40x40xbf16, #tpu.memory_space<vmem>>, %arg3: memref<40x1xi32, #tpu.memory_space<vmem>>, %arg4: memref<1x40xi32, #tpu.memory_space<vmem>>, %arg5: memref<8x64xbf16, #tpu.memory_space<vmem>>, %arg6: memref<8x8xf32, #tpu.memory_space<vmem>>, %arg7: memref<80x32xbf16, #tpu.memory_space<vmem>>, %arg8: memref<32x32xbf16, #tpu.memory_space<vmem>>, %arg9: memref<64x32xbf16, #tpu.memory_space<vmem>>, %arg10: memref<64x64xbf16, #tpu.memory_space<vmem>>, %arg11: memref<32x16xf32, #tpu.memory_space<vmem>>, %arg12: memref<16x2xf32, #tpu.memory_space<vmem>>, %arg13: memref<15x80xf32, #tpu.memory_space<vmem>>, %arg14: memref<8x2xf32, #tpu.memory_space<vmem>>, %arg15: memref<8x2xf32, #tpu.memory_space<vmem>>, %arg16: memref<8x32xf32, #tpu.memory_space<vmem>>) attributes {dimension_semantics = [], scalar_prefetch = 0 : i64, scratch_operands = 1 : i64, tpu.core_type = #tpu.core_type<tc>} {
    %c0 = arith.constant 0 : index
    %c0_0 = arith.constant 0 : index
    %0 = vector.load %arg13[%c0, %c0_0] : memref<15x80xf32, #tpu.memory_space<vmem>>, vector<15x80xf32>
    %1 = vector.extract_strided_slice %0 {offsets = [0, 0], sizes = [1, 80], strides = [1, 1]} : vector<15x80xf32> to vector<1x80xf32>
    %2 = vector.extract_strided_slice %0 {offsets = [1, 0], sizes = [1, 80], strides = [1, 1]} : vector<15x80xf32> to vector<1x80xf32>
    %c0_1 = arith.constant 0 : index
    %c0_2 = arith.constant 0 : index
    %3 = vector.load %arg0[%c0_1, %c0_2] : memref<40x80xf32, #tpu.memory_space<vmem>>, vector<40x80xf32>
    %cst = arith.constant dense<0.000000e+00> : vector<80xf32>
    %4 = vector.multi_reduction <add>, %3, %cst [0] : vector<40x80xf32> to vector<80xf32>
    %5 = vector.shape_cast %4 : vector<80xf32> to vector<1x80xf32>
    %cst_3 = arith.constant 4.000000e+01 : f32
    %6 = vector.broadcast %cst_3 : f32 to vector<1x80xf32>
    %7 = arith.divf %5, %6 : vector<1x80xf32>
    %8 = vector.broadcast %7 : vector<1x80xf32> to vector<40x80xf32>
    %9 = arith.subf %3, %8 : vector<40x80xf32>
    %10 = arith.mulf %9, %9 : vector<40x80xf32>
    %cst_4 = arith.constant dense<0.000000e+00> : vector<80xf32>
    %11 = vector.multi_reduction <add>, %10, %cst_4 [0] : vector<40x80xf32> to vector<80xf32>
    %12 = vector.shape_cast %11 : vector<80xf32> to vector<1x80xf32>
    %cst_5 = arith.constant 4.000000e+01 : f32
    %13 = vector.broadcast %cst_5 : f32 to vector<1x80xf32>
    %14 = arith.divf %12, %13 : vector<1x80xf32>
    %15 = vector.broadcast %7 : vector<1x80xf32> to vector<40x80xf32>
    %16 = arith.subf %3, %15 : vector<40x80xf32>
    %cst_6 = arith.constant 9.99999974E-6 : f32
    %17 = vector.broadcast %cst_6 : f32 to vector<1x80xf32>
    %18 = arith.addf %14, %17 : vector<1x80xf32>
    %19 = math.rsqrt %18 : vector<1x80xf32>
    %20 = vector.broadcast %19 : vector<1x80xf32> to vector<40x80xf32>
    %21 = arith.mulf %16, %20 : vector<40x80xf32>
    %22 = vector.broadcast %1 : vector<1x80xf32> to vector<40x80xf32>
    %23 = arith.mulf %21, %22 : vector<40x80xf32>
    %24 = vector.broadcast %2 : vector<1x80xf32> to vector<40x80xf32>
    %25 = arith.addf %23, %24 : vector<40x80xf32>
    %cst_7 = arith.constant 0.000000e+00 : f32
    %26 = vector.broadcast %cst_7 : f32 to vector<40x80xf32>
    %27 = arith.cmpf ogt, %25, %26 : vector<40x80xf32>
    %cst_8 = arith.constant 2.000000e-01 : f32
    %28 = vector.broadcast %cst_8 : f32 to vector<40x80xf32>
    %29 = arith.mulf %28, %25 : vector<40x80xf32>
    %30 = arith.select %27, %25, %29 : vector<40x80xi1>, vector<40x80xf32>
    %31 = arith.truncf %30 : vector<40x80xf32> to vector<40x80xbf16>
    %c0_9 = arith.constant 0 : index
    %c0_10 = arith.constant 0 : index
    %32 = vector.load %arg7[%c0_9, %c0_10] : memref<80x32xbf16, #tpu.memory_space<vmem>>, vector<80x32xbf16>
    %cst_11 = arith.constant dense<0.000000e+00> : vector<40x32xf32>
    %33 = tpu.matmul %31, %32, %cst_11 {dimension_numbers = #tpu.dot_dimension_numbers<[1], [0], [0], [1], [0, 0, 1, 1], [], []>} : vector<40x80xbf16>, vector<80x32xbf16>, vector<40x32xf32> -> vector<40x32xf32>
    %c0_12 = arith.constant 0 : index
    %c0_13 = arith.constant 0 : index
    %34 = vector.load %arg1[%c0_12, %c0_13] : memref<40x40xbf16, #tpu.memory_space<vmem>>, vector<40x40xbf16>
    %35 = vector.extract_strided_slice %33 {offsets = [0, 0], sizes = [40, 16], strides = [1, 1]} : vector<40x32xf32> to vector<40x16xf32>
    %36 = arith.truncf %35 : vector<40x16xf32> to vector<40x16xbf16>
    %cst_14 = arith.constant dense<0.000000e+00> : vector<40x16xf32>
    %37 = tpu.matmul %34, %36, %cst_14 {dimension_numbers = #tpu.dot_dimension_numbers<[1], [0], [0], [1], [0, 0, 1, 1], [], []>} : vector<40x40xbf16>, vector<40x16xbf16>, vector<40x16xf32> -> vector<40x16xf32>
    %c0_15 = arith.constant 0 : index
    %c0_16 = arith.constant 0 : index
    %38 = vector.load %arg2[%c0_15, %c0_16] : memref<40x40xbf16, #tpu.memory_space<vmem>>, vector<40x40xbf16>
    %39 = vector.extract_strided_slice %33 {offsets = [0, 16], sizes = [40, 16], strides = [1, 1]} : vector<40x32xf32> to vector<40x16xf32>
    %40 = arith.truncf %39 : vector<40x16xf32> to vector<40x16xbf16>
    %cst_17 = arith.constant dense<0.000000e+00> : vector<40x16xf32>
    %41 = tpu.matmul %38, %40, %cst_17 {dimension_numbers = #tpu.dot_dimension_numbers<[1], [0], [0], [1], [0, 0, 1, 1], [], []>} : vector<40x40xbf16>, vector<40x16xbf16>, vector<40x16xf32> -> vector<40x16xf32>
    %42 = tpu.concatenate %37, %41 in 1 : vector<40x16xf32>, vector<40x16xf32> -> vector<40x32xf32>
    %43 = vector.extract_strided_slice %0 {offsets = [2, 0], sizes = [1, 32], strides = [1, 1]} : vector<15x80xf32> to vector<1x32xf32>
    %44 = vector.broadcast %43 : vector<1x32xf32> to vector<40x32xf32>
    %45 = arith.addf %42, %44 : vector<40x32xf32>
    %cst_18 = arith.constant dense<0.000000e+00> : vector<32xf32>
    %46 = vector.multi_reduction <add>, %45, %cst_18 [0] : vector<40x32xf32> to vector<32xf32>
    %47 = vector.shape_cast %46 : vector<32xf32> to vector<1x32xf32>
    %cst_19 = arith.constant 4.000000e+01 : f32
    %48 = vector.broadcast %cst_19 : f32 to vector<1x32xf32>
    %49 = arith.divf %47, %48 : vector<1x32xf32>
    %50 = vector.broadcast %49 : vector<1x32xf32> to vector<40x32xf32>
    %51 = arith.subf %45, %50 : vector<40x32xf32>
    %52 = arith.mulf %51, %51 : vector<40x32xf32>
    %cst_20 = arith.constant dense<0.000000e+00> : vector<32xf32>
    %53 = vector.multi_reduction <add>, %52, %cst_20 [0] : vector<40x32xf32> to vector<32xf32>
    %54 = vector.shape_cast %53 : vector<32xf32> to vector<1x32xf32>
    %cst_21 = arith.constant 4.000000e+01 : f32
    %55 = vector.broadcast %cst_21 : f32 to vector<1x32xf32>
    %56 = arith.divf %54, %55 : vector<1x32xf32>
    %57 = vector.broadcast %49 : vector<1x32xf32> to vector<40x32xf32>
    %58 = arith.subf %45, %57 : vector<40x32xf32>
    %cst_22 = arith.constant 9.99999974E-6 : f32
    %59 = vector.broadcast %cst_22 : f32 to vector<1x32xf32>
    %60 = arith.addf %56, %59 : vector<1x32xf32>
    %61 = math.rsqrt %60 : vector<1x32xf32>
    %62 = vector.broadcast %61 : vector<1x32xf32> to vector<40x32xf32>
    %63 = arith.mulf %58, %62 : vector<40x32xf32>
    %cst_23 = arith.constant 0.000000e+00 : f32
    %64 = vector.broadcast %cst_23 : f32 to vector<40x32xf32>
    %65 = arith.cmpf ogt, %63, %64 : vector<40x32xf32>
    %cst_24 = arith.constant 2.000000e-01 : f32
    %66 = vector.broadcast %cst_24 : f32 to vector<40x32xf32>
    %67 = arith.mulf %66, %63 : vector<40x32xf32>
    %68 = arith.select %65, %63, %67 : vector<40x32xi1>, vector<40x32xf32>
    %69 = vector.extract_strided_slice %0 {offsets = [3, 0], sizes = [1, 32], strides = [1, 1]} : vector<15x80xf32> to vector<1x32xf32>
    %cst_25 = arith.constant dense<0.000000e+00> : vector<40x1xf32>
    %70 = tpu.matmul %68, %69, %cst_25 {dimension_numbers = #tpu.dot_dimension_numbers<[1], [1], [0], [0], [0, 0, 1, 0], [], []>} : vector<40x32xf32>, vector<1x32xf32>, vector<40x1xf32> -> vector<40x1xf32>
    %cst_26 = arith.constant 1.000000e+00 : f32
    %71 = vector.broadcast %cst_26 : f32 to vector<1x1xf32>
    %cst_27 = arith.constant dense<0.000000e+00> : vector<1x40xf32>
    %72 = tpu.matmul %71, %70, %cst_27 {dimension_numbers = #tpu.dot_dimension_numbers<[1], [1], [0], [0], [0, 0, 1, 0], [], []>} : vector<1x1xf32>, vector<40x1xf32>, vector<1x40xf32> -> vector<1x40xf32>
    %73 = arith.mulf %69, %69 : vector<1x32xf32>
    %74 = vector.shape_cast %73 : vector<1x32xf32> to vector<1x1x32xf32>
    %cst_28 = arith.constant dense<0.000000e+00> : vector<1xf32>
    %75 = vector.multi_reduction <add>, %74, %cst_28 [1, 2] : vector<1x1x32xf32> to vector<1xf32>
    %76 = vector.shape_cast %75 : vector<1xf32> to vector<1x1x1xf32>
    %77 = vector.extract %76[0, 0, 0] : f32 from vector<1x1x1xf32>
    %78 = vector.broadcast %77 : f32 to vector<1x1xf32>
    %79 = math.rsqrt %78 : vector<1x1xf32>
    %80 = vector.broadcast %79 : vector<1x1xf32> to vector<40x1xf32>
    %81 = arith.mulf %70, %80 : vector<40x1xf32>
    %82 = math.tanh %81 : vector<40x1xf32>
    %c0_29 = arith.constant 0 : index
    %c0_30 = arith.constant 0 : index
    %83 = vector.load %arg3[%c0_29, %c0_30] : memref<40x1xi32, #tpu.memory_space<vmem>>, vector<40x1xi32>
    %c0_31 = arith.constant 0 : index
    %c0_32 = arith.constant 0 : index
    %84 = vector.load %arg4[%c0_31, %c0_32] : memref<1x40xi32, #tpu.memory_space<vmem>>, vector<1x40xi32>
    %85 = vector.broadcast %83 : vector<40x1xi32> to vector<40x40xi32>
    %86 = vector.broadcast %84 : vector<1x40xi32> to vector<40x40xi32>
    %87 = arith.cmpi eq, %85, %86 : vector<40x40xi32>
    %88 = tpu.iota {dimensions = array<i32: 0>} : vector<40x40xi32>
    %89 = tpu.iota {dimensions = array<i32: 1>} : vector<40x40xi32>
    %90 = vector.broadcast %72 : vector<1x40xf32> to vector<40x40xf32>
    %91 = vector.broadcast %70 : vector<40x1xf32> to vector<40x40xf32>
    %92 = arith.cmpf ogt, %90, %91 : vector<40x40xf32>
    %93 = vector.broadcast %72 : vector<1x40xf32> to vector<40x40xf32>
    %94 = vector.broadcast %70 : vector<40x1xf32> to vector<40x40xf32>
    %95 = arith.cmpf oeq, %93, %94 : vector<40x40xf32>
    %96 = arith.cmpi slt, %89, %88 : vector<40x40xi32>
    %97 = arith.andi %95, %96 : vector<40x40xi1>
    %98 = arith.ori %92, %97 : vector<40x40xi1>
    %99 = arith.andi %98, %87 : vector<40x40xi1>
    %cst_33 = arith.constant 1.000000e+00 : f32
    %cst_34 = arith.constant 0.000000e+00 : f32
    %100 = vector.broadcast %cst_33 : f32 to vector<40x40xf32>
    %101 = vector.broadcast %cst_34 : f32 to vector<40x40xf32>
    %102 = arith.select %99, %100, %101 : vector<40x40xi1>, vector<40x40xf32>
    %cst_35 = arith.constant dense<0.000000e+00> : vector<40xf32>
    %103 = vector.multi_reduction <add>, %102, %cst_35 [1] : vector<40x40xf32> to vector<40xf32>
    %104 = vector.shape_cast %103 : vector<40xf32> to vector<40x1xf32>
    %cst_36 = arith.constant 1.000000e+00 : f32
    %cst_37 = arith.constant 0.000000e+00 : f32
    %105 = vector.broadcast %cst_36 : f32 to vector<40x40xf32>
    %106 = vector.broadcast %cst_37 : f32 to vector<40x40xf32>
    %107 = arith.select %87, %105, %106 : vector<40x40xi1>, vector<40x40xf32>
    %cst_38 = arith.constant dense<0.000000e+00> : vector<40xf32>
    %108 = vector.multi_reduction <add>, %107, %cst_38 [1] : vector<40x40xf32> to vector<40xf32>
    %109 = vector.shape_cast %108 : vector<40xf32> to vector<40x1xf32>
    %cst_39 = arith.constant 8.000000e-01 : f32
    %110 = vector.broadcast %cst_39 : f32 to vector<40x1xf32>
    %111 = arith.mulf %110, %109 : vector<40x1xf32>
    %112 = math.ceil %111 : vector<40x1xf32>
    %113 = arith.cmpf olt, %104, %112 : vector<40x1xf32>
    %114 = vector.broadcast %82 : vector<40x1xf32> to vector<40x32xf32>
    %115 = arith.mulf %68, %114 : vector<40x32xf32>
    %c0_i32 = arith.constant 0 : i32
    %c8_i32 = arith.constant 8 : i32
    %116 = arith.addi %c0_i32, %c8_i32 : i32
    %c1_i32 = arith.constant 1 : i32
    scf.for %arg17 = %c0_i32 to %116 step %c1_i32  : i32 {
      %c1_i32_101 = arith.constant 1 : i32
      %289 = arith.muli %arg17, %c1_i32_101 : i32
      %c0_i32_102 = arith.constant 0 : i32
      %290 = arith.addi %c0_i32_102, %289 : i32
      %291 = vector.broadcast %290 : i32 to vector<40x1xi32>
      %292 = arith.cmpi eq, %83, %291 : vector<40x1xi32>
      %293 = arith.andi %292, %113 : vector<40x1xi1>
      %cst_103 = arith.constant -1.000000e+30 : f32
      %294 = vector.shape_cast %293 : vector<40x1xi1> to vector<40x1xi1>
      %295 = vector.broadcast %294 : vector<40x1xi1> to vector<40x32xi1>
      %296 = vector.broadcast %cst_103 : f32 to vector<40x32xf32>
      %297 = arith.select %295, %115, %296 : vector<40x32xi1>, vector<40x32xf32>
      %cst_104 = arith.constant dense<0xFF800000> : vector<32xf32>
      %298 = vector.multi_reduction <maximumf>, %297, %cst_104 [0] : vector<40x32xf32> to vector<32xf32>
      %299 = vector.shape_cast %298 : vector<32xf32> to vector<1x32xf32>
      %cst_105 = arith.constant -5.000000e+29 : f32
      %300 = vector.broadcast %cst_105 : f32 to vector<1x32xf32>
      %301 = arith.cmpf ogt, %299, %300 : vector<1x32xf32>
      %cst_106 = arith.constant 0.000000e+00 : f32
      %302 = vector.broadcast %cst_106 : f32 to vector<1x32xf32>
      %303 = arith.select %301, %299, %302 : vector<1x32xi1>, vector<1x32xf32>
      %304 = arith.index_cast %290 : i32 to index
      %c0_107 = arith.constant 0 : index
      %305 = vector.load %arg16[%304, %c0_107] : memref<8x32xf32, #tpu.memory_space<vmem>>, vector<1x32xf32>
      tpu.vector_store %arg16[%304, %c0_107], %303 {strides = array<i32>} : memref<8x32xf32, #tpu.memory_space<vmem>>, vector<1x32xf32>,
    }
    %c8_i32_40 = arith.constant 8 : i32
    %c0_41 = arith.constant 0 : index
    %c0_42 = arith.constant 0 : index
    %117 = vector.load %arg16[%c0_41, %c0_42] : memref<8x32xf32, #tpu.memory_space<vmem>>, vector<8x32xf32>
    %c0_43 = arith.constant 0 : index
    %c0_44 = arith.constant 0 : index
    %118 = vector.load %arg6[%c0_43, %c0_44] : memref<8x8xf32, #tpu.memory_space<vmem>>, vector<8x8xf32>
    %cst_45 = arith.constant 5.000000e-01 : f32
    %119 = vector.broadcast %cst_45 : f32 to vector<8x8xf32>
    %120 = arith.cmpf ogt, %118, %119 : vector<8x8xf32>
    %c0_46 = arith.constant 0 : index
    %c0_47 = arith.constant 0 : index
    %121 = vector.load %arg5[%c0_46, %c0_47] : memref<8x64xbf16, #tpu.memory_space<vmem>>, vector<8x64xbf16>
    %c0_48 = arith.constant 0 : index
    %c0_49 = arith.constant 0 : index
    %122 = vector.load %arg10[%c0_48, %c0_49] : memref<64x64xbf16, #tpu.memory_space<vmem>>, vector<64x64xbf16>
    %cst_50 = arith.constant dense<0.000000e+00> : vector<8x64xf32>
    %123 = tpu.matmul %121, %122, %cst_50 {dimension_numbers = #tpu.dot_dimension_numbers<[1], [0], [0], [1], [0, 0, 1, 1], [], []>} : vector<8x64xbf16>, vector<64x64xbf16>, vector<8x64xf32> -> vector<8x64xf32>
    %124 = vector.extract_strided_slice %0 {offsets = [4, 0], sizes = [1, 64], strides = [1, 1]} : vector<15x80xf32> to vector<1x64xf32>
    %125 = vector.broadcast %124 : vector<1x64xf32> to vector<8x64xf32>
    %126 = arith.addf %123, %125 : vector<8x64xf32>
    %127 = vector.extract_strided_slice %0 {offsets = [5, 0], sizes = [1, 16], strides = [1, 1]} : vector<15x80xf32> to vector<1x16xf32>
    %128 = vector.extract_strided_slice %0 {offsets = [6, 0], sizes = [1, 16], strides = [1, 1]} : vector<15x80xf32> to vector<1x16xf32>
    %129 = vector.extract_strided_slice %0 {offsets = [7, 0], sizes = [1, 16], strides = [1, 1]} : vector<15x80xf32> to vector<1x16xf32>
    %130 = vector.extract_strided_slice %0 {offsets = [8, 0], sizes = [1, 16], strides = [1, 1]} : vector<15x80xf32> to vector<1x16xf32>
    %131 = arith.truncf %117 : vector<8x32xf32> to vector<8x32xbf16>
    %c0_51 = arith.constant 0 : index
    %c0_52 = arith.constant 0 : index
    %132 = vector.load %arg8[%c0_51, %c0_52] : memref<32x32xbf16, #tpu.memory_space<vmem>>, vector<32x32xbf16>
    %cst_53 = arith.constant dense<0.000000e+00> : vector<8x32xf32>
    %133 = tpu.matmul %131, %132, %cst_53 {dimension_numbers = #tpu.dot_dimension_numbers<[1], [0], [0], [1], [0, 0, 1, 1], [], []>} : vector<8x32xbf16>, vector<32x32xbf16>, vector<8x32xf32> -> vector<8x32xf32>
    %134 = vector.extract_strided_slice %133 {offsets = [0, 0], sizes = [8, 16], strides = [1, 1]} : vector<8x32xf32> to vector<8x16xf32>
    %135 = vector.broadcast %127 : vector<1x16xf32> to vector<8x16xf32>
    %136 = arith.addf %134, %135 : vector<8x16xf32>
    %137 = vector.extract_strided_slice %133 {offsets = [0, 16], sizes = [8, 16], strides = [1, 1]} : vector<8x32xf32> to vector<8x16xf32>
    %138 = vector.broadcast %128 : vector<1x16xf32> to vector<8x16xf32>
    %139 = arith.addf %137, %138 : vector<8x16xf32>
    %140 = vector.shape_cast %139 : vector<8x16xf32> to vector<8x1x16xf32>
    %141 = vector.shape_cast %136 : vector<8x16xf32> to vector<1x8x16xf32>
    %142 = vector.broadcast %140 : vector<8x1x16xf32> to vector<8x8x16xf32>
    %143 = vector.broadcast %141 : vector<1x8x16xf32> to vector<8x8x16xf32>
    %144 = arith.addf %142, %143 : vector<8x8x16xf32>
    %cst_54 = arith.constant 0.000000e+00 : f32
    %145 = vector.broadcast %cst_54 : f32 to vector<8x8x16xf32>
    %146 = arith.cmpf ogt, %144, %145 : vector<8x8x16xf32>
    %cst_55 = arith.constant 2.000000e-01 : f32
    %147 = vector.broadcast %cst_55 : f32 to vector<8x8x16xf32>
    %148 = arith.mulf %147, %144 : vector<8x8x16xf32>
    %149 = arith.select %146, %144, %148 : vector<8x8x16xi1>, vector<8x8x16xf32>
    %150 = vector.shape_cast %129 : vector<1x16xf32> to vector<1x1x16xf32>
    %151 = vector.broadcast %150 : vector<1x1x16xf32> to vector<8x8x16xf32>
    %152 = arith.mulf %149, %151 : vector<8x8x16xf32>
    %cst_56 = arith.constant dense<0.000000e+00> : vector<8x8xf32>
    %153 = vector.multi_reduction <add>, %152, %cst_56 [2] : vector<8x8x16xf32> to vector<8x8xf32>
    %cst_57 = arith.constant -1.000000e+30 : f32
    %154 = vector.broadcast %cst_57 : f32 to vector<8x8xf32>
    %155 = arith.select %120, %153, %154 : vector<8x8xi1>, vector<8x8xf32>
    %cst_58 = arith.constant dense<0xFF800000> : vector<8xf32>
    %156 = vector.multi_reduction <maximumf>, %155, %cst_58 [1] : vector<8x8xf32> to vector<8xf32>
    %157 = vector.shape_cast %156 : vector<8xf32> to vector<8x1xf32>
    %158 = vector.broadcast %157 : vector<8x1xf32> to vector<8x8xf32>
    %159 = arith.subf %155, %158 : vector<8x8xf32>
    %160 = math.exp %159 : vector<8x8xf32>
    %cst_59 = arith.constant 0.000000e+00 : f32
    %161 = vector.broadcast %cst_59 : f32 to vector<8x8xf32>
    %162 = arith.select %120, %160, %161 : vector<8x8xi1>, vector<8x8xf32>
    %cst_60 = arith.constant dense<0.000000e+00> : vector<8xf32>
    %163 = vector.multi_reduction <add>, %162, %cst_60 [1] : vector<8x8xf32> to vector<8xf32>
    %164 = vector.shape_cast %163 : vector<8xf32> to vector<8x1xf32>
    %165 = tpu.reciprocal %164 : vector<8x1xf32> -> vector<8x1xf32>
    %166 = vector.broadcast %165 : vector<8x1xf32> to vector<8x8xf32>
    %167 = arith.mulf %162, %166 : vector<8x8xf32>
    %cst_61 = arith.constant dense<0.000000e+00> : vector<8x16xf32>
    %168 = tpu.matmul %167, %136, %cst_61 {dimension_numbers = #tpu.dot_dimension_numbers<[1], [0], [0], [1], [0, 0, 1, 1], [], []>} : vector<8x8xf32>, vector<8x16xf32>, vector<8x16xf32> -> vector<8x16xf32>
    %169 = vector.broadcast %130 : vector<1x16xf32> to vector<8x16xf32>
    %170 = arith.addf %168, %169 : vector<8x16xf32>
    %171 = vector.extract_strided_slice %0 {offsets = [9, 0], sizes = [1, 16], strides = [1, 1]} : vector<15x80xf32> to vector<1x16xf32>
    %172 = vector.extract_strided_slice %0 {offsets = [10, 0], sizes = [1, 16], strides = [1, 1]} : vector<15x80xf32> to vector<1x16xf32>
    %173 = vector.extract_strided_slice %0 {offsets = [11, 0], sizes = [1, 16], strides = [1, 1]} : vector<15x80xf32> to vector<1x16xf32>
    %174 = vector.extract_strided_slice %0 {offsets = [12, 0], sizes = [1, 16], strides = [1, 1]} : vector<15x80xf32> to vector<1x16xf32>
    %175 = arith.truncf %126 : vector<8x64xf32> to vector<8x64xbf16>
    %c0_62 = arith.constant 0 : index
    %c0_63 = arith.constant 0 : index
    %176 = vector.load %arg9[%c0_62, %c0_63] : memref<64x32xbf16, #tpu.memory_space<vmem>>, vector<64x32xbf16>
    %cst_64 = arith.constant dense<0.000000e+00> : vector<8x32xf32>
    %177 = tpu.matmul %175, %176, %cst_64 {dimension_numbers = #tpu.dot_dimension_numbers<[1], [0], [0], [1], [0, 0, 1, 1], [], []>} : vector<8x64xbf16>, vector<64x32xbf16>, vector<8x32xf32> -> vector<8x32xf32>
    %178 = vector.extract_strided_slice %177 {offsets = [0, 0], sizes = [8, 16], strides = [1, 1]} : vector<8x32xf32> to vector<8x16xf32>
    %179 = vector.broadcast %171 : vector<1x16xf32> to vector<8x16xf32>
    %180 = arith.addf %178, %179 : vector<8x16xf32>
    %181 = vector.extract_strided_slice %177 {offsets = [0, 16], sizes = [8, 16], strides = [1, 1]} : vector<8x32xf32> to vector<8x16xf32>
    %182 = vector.broadcast %172 : vector<1x16xf32> to vector<8x16xf32>
    %183 = arith.addf %181, %182 : vector<8x16xf32>
    %184 = vector.shape_cast %183 : vector<8x16xf32> to vector<8x1x16xf32>
    %185 = vector.shape_cast %180 : vector<8x16xf32> to vector<1x8x16xf32>
    %186 = vector.broadcast %184 : vector<8x1x16xf32> to vector<8x8x16xf32>
    %187 = vector.broadcast %185 : vector<1x8x16xf32> to vector<8x8x16xf32>
    %188 = arith.addf %186, %187 : vector<8x8x16xf32>
    %cst_65 = arith.constant 0.000000e+00 : f32
    %189 = vector.broadcast %cst_65 : f32 to vector<8x8x16xf32>
    %190 = arith.cmpf ogt, %188, %189 : vector<8x8x16xf32>
    %cst_66 = arith.constant 2.000000e-01 : f32
    %191 = vector.broadcast %cst_66 : f32 to vector<8x8x16xf32>
    %192 = arith.mulf %191, %188 : vector<8x8x16xf32>
    %193 = arith.select %190, %188, %192 : vector<8x8x16xi1>, vector<8x8x16xf32>
    %194 = vector.shape_cast %173 : vector<1x16xf32> to vector<1x1x16xf32>
    %195 = vector.broadcast %194 : vector<1x1x16xf32> to vector<8x8x16xf32>
    %196 = arith.mulf %193, %195 : vector<8x8x16xf32>
    %cst_67 = arith.constant dense<0.000000e+00> : vector<8x8xf32>
    %197 = vector.multi_reduction <add>, %196, %cst_67 [2] : vector<8x8x16xf32> to vector<8x8xf32>
    %cst_68 = arith.constant -1.000000e+30 : f32
    %198 = vector.broadcast %cst_68 : f32 to vector<8x8xf32>
    %199 = arith.select %120, %197, %198 : vector<8x8xi1>, vector<8x8xf32>
    %cst_69 = arith.constant dense<0xFF800000> : vector<8xf32>
    %200 = vector.multi_reduction <maximumf>, %199, %cst_69 [1] : vector<8x8xf32> to vector<8xf32>
    %201 = vector.shape_cast %200 : vector<8xf32> to vector<8x1xf32>
    %202 = vector.broadcast %201 : vector<8x1xf32> to vector<8x8xf32>
    %203 = arith.subf %199, %202 : vector<8x8xf32>
    %204 = math.exp %203 : vector<8x8xf32>
    %cst_70 = arith.constant 0.000000e+00 : f32
    %205 = vector.broadcast %cst_70 : f32 to vector<8x8xf32>
    %206 = arith.select %120, %204, %205 : vector<8x8xi1>, vector<8x8xf32>
    %cst_71 = arith.constant dense<0.000000e+00> : vector<8xf32>
    %207 = vector.multi_reduction <add>, %206, %cst_71 [1] : vector<8x8xf32> to vector<8xf32>
    %208 = vector.shape_cast %207 : vector<8xf32> to vector<8x1xf32>
    %209 = tpu.reciprocal %208 : vector<8x1xf32> -> vector<8x1xf32>
    %210 = vector.broadcast %209 : vector<8x1xf32> to vector<8x8xf32>
    %211 = arith.mulf %206, %210 : vector<8x8xf32>
    %cst_72 = arith.constant dense<0.000000e+00> : vector<8x16xf32>
    %212 = tpu.matmul %211, %180, %cst_72 {dimension_numbers = #tpu.dot_dimension_numbers<[1], [0], [0], [1], [0, 0, 1, 1], [], []>} : vector<8x8xf32>, vector<8x16xf32>, vector<8x16xf32> -> vector<8x16xf32>
    %213 = vector.broadcast %174 : vector<1x16xf32> to vector<8x16xf32>
    %214 = arith.addf %212, %213 : vector<8x16xf32>
    %cst_73 = arith.constant dense<0.000000e+00> : vector<16xf32>
    %215 = vector.multi_reduction <add>, %170, %cst_73 [0] : vector<8x16xf32> to vector<16xf32>
    %216 = vector.shape_cast %215 : vector<16xf32> to vector<1x16xf32>
    %cst_74 = arith.constant 8.000000e+00 : f32
    %217 = vector.broadcast %cst_74 : f32 to vector<1x16xf32>
    %218 = arith.divf %216, %217 : vector<1x16xf32>
    %219 = vector.broadcast %218 : vector<1x16xf32> to vector<8x16xf32>
    %220 = arith.subf %170, %219 : vector<8x16xf32>
    %221 = arith.mulf %220, %220 : vector<8x16xf32>
    %cst_75 = arith.constant dense<0.000000e+00> : vector<16xf32>
    %222 = vector.multi_reduction <add>, %221, %cst_75 [0] : vector<8x16xf32> to vector<16xf32>
    %223 = vector.shape_cast %222 : vector<16xf32> to vector<1x16xf32>
    %cst_76 = arith.constant 8.000000e+00 : f32
    %224 = vector.broadcast %cst_76 : f32 to vector<1x16xf32>
    %225 = arith.divf %223, %224 : vector<1x16xf32>
    %226 = vector.broadcast %218 : vector<1x16xf32> to vector<8x16xf32>
    %227 = arith.subf %170, %226 : vector<8x16xf32>
    %cst_77 = arith.constant 9.99999974E-6 : f32
    %228 = vector.broadcast %cst_77 : f32 to vector<1x16xf32>
    %229 = arith.addf %225, %228 : vector<1x16xf32>
    %230 = math.rsqrt %229 : vector<1x16xf32>
    %231 = vector.broadcast %230 : vector<1x16xf32> to vector<8x16xf32>
    %232 = arith.mulf %227, %231 : vector<8x16xf32>
    %cst_78 = arith.constant 0.000000e+00 : f32
    %233 = vector.broadcast %cst_78 : f32 to vector<8x16xf32>
    %234 = arith.cmpf ogt, %232, %233 : vector<8x16xf32>
    %cst_79 = arith.constant 2.000000e-01 : f32
    %235 = vector.broadcast %cst_79 : f32 to vector<8x16xf32>
    %236 = arith.mulf %235, %232 : vector<8x16xf32>
    %237 = arith.select %234, %232, %236 : vector<8x16xi1>, vector<8x16xf32>
    %cst_80 = arith.constant dense<0.000000e+00> : vector<16xf32>
    %238 = vector.multi_reduction <add>, %214, %cst_80 [0] : vector<8x16xf32> to vector<16xf32>
    %239 = vector.shape_cast %238 : vector<16xf32> to vector<1x16xf32>
    %cst_81 = arith.constant 8.000000e+00 : f32
    %240 = vector.broadcast %cst_81 : f32 to vector<1x16xf32>
    %241 = arith.divf %239, %240 : vector<1x16xf32>
    %242 = vector.broadcast %241 : vector<1x16xf32> to vector<8x16xf32>
    %243 = arith.subf %214, %242 : vector<8x16xf32>
    %244 = arith.mulf %243, %243 : vector<8x16xf32>
    %cst_82 = arith.constant dense<0.000000e+00> : vector<16xf32>
    %245 = vector.multi_reduction <add>, %244, %cst_82 [0] : vector<8x16xf32> to vector<16xf32>
    %246 = vector.shape_cast %245 : vector<16xf32> to vector<1x16xf32>
    %cst_83 = arith.constant 8.000000e+00 : f32
    %247 = vector.broadcast %cst_83 : f32 to vector<1x16xf32>
    %248 = arith.divf %246, %247 : vector<1x16xf32>
    %249 = vector.broadcast %241 : vector<1x16xf32> to vector<8x16xf32>
    %250 = arith.subf %214, %249 : vector<8x16xf32>
    %cst_84 = arith.constant 9.99999974E-6 : f32
    %251 = vector.broadcast %cst_84 : f32 to vector<1x16xf32>
    %252 = arith.addf %248, %251 : vector<1x16xf32>
    %253 = math.rsqrt %252 : vector<1x16xf32>
    %254 = vector.broadcast %253 : vector<1x16xf32> to vector<8x16xf32>
    %255 = arith.mulf %250, %254 : vector<8x16xf32>
    %cst_85 = arith.constant 0.000000e+00 : f32
    %256 = vector.broadcast %cst_85 : f32 to vector<8x16xf32>
    %257 = arith.cmpf ogt, %255, %256 : vector<8x16xf32>
    %cst_86 = arith.constant 2.000000e-01 : f32
    %258 = vector.broadcast %cst_86 : f32 to vector<8x16xf32>
    %259 = arith.mulf %258, %255 : vector<8x16xf32>
    %260 = arith.select %257, %255, %259 : vector<8x16xi1>, vector<8x16xf32>
    %261 = tpu.concatenate %237, %260 in 1 : vector<8x16xf32>, vector<8x16xf32> -> vector<8x32xf32>
    %c0_87 = arith.constant 0 : index
    %c0_88 = arith.constant 0 : index
    %262 = vector.load %arg11[%c0_87, %c0_88] : memref<32x16xf32, #tpu.memory_space<vmem>>, vector<32x16xf32>
    %cst_89 = arith.constant dense<0.000000e+00> : vector<8x16xf32>
    %263 = tpu.matmul %261, %262, %cst_89 {dimension_numbers = #tpu.dot_dimension_numbers<[1], [0], [0], [1], [0, 0, 1, 1], [], []>} : vector<8x32xf32>, vector<32x16xf32>, vector<8x16xf32> -> vector<8x16xf32>
    %264 = vector.extract_strided_slice %0 {offsets = [13, 0], sizes = [1, 16], strides = [1, 1]} : vector<15x80xf32> to vector<1x16xf32>
    %265 = vector.broadcast %264 : vector<1x16xf32> to vector<8x16xf32>
    %266 = arith.addf %263, %265 : vector<8x16xf32>
    %cst_90 = arith.constant 0.000000e+00 : f32
    %267 = vector.broadcast %cst_90 : f32 to vector<8x16xf32>
    %268 = arith.cmpf ogt, %266, %267 : vector<8x16xf32>
    %cst_91 = arith.constant 2.000000e-01 : f32
    %269 = vector.broadcast %cst_91 : f32 to vector<8x16xf32>
    %270 = arith.mulf %269, %266 : vector<8x16xf32>
    %271 = arith.select %268, %266, %270 : vector<8x16xi1>, vector<8x16xf32>
    %c0_92 = arith.constant 0 : index
    %c0_93 = arith.constant 0 : index
    %272 = vector.load %arg12[%c0_92, %c0_93] : memref<16x2xf32, #tpu.memory_space<vmem>>, vector<16x2xf32>
    %cst_94 = arith.constant dense<0.000000e+00> : vector<8x2xf32>
    %273 = tpu.matmul %271, %272, %cst_94 {dimension_numbers = #tpu.dot_dimension_numbers<[1], [0], [0], [1], [0, 0, 1, 1], [], []>} : vector<8x16xf32>, vector<16x2xf32>, vector<8x2xf32> -> vector<8x2xf32>
    %274 = vector.extract_strided_slice %0 {offsets = [14, 0], sizes = [1, 2], strides = [1, 1]} : vector<15x80xf32> to vector<1x2xf32>
    %275 = vector.broadcast %274 : vector<1x2xf32> to vector<8x2xf32>
    %276 = arith.addf %273, %275 : vector<8x2xf32>
    %c0_95 = arith.constant 0 : index
    %c0_96 = arith.constant 0 : index
    %277 = vector.load %arg14[%c0_95, %c0_96] : memref<8x2xf32, #tpu.memory_space<vmem>>, vector<8x2xf32>
    tpu.vector_store %arg14[%c0_95, %c0_96], %276 {strides = array<i32>} : memref<8x2xf32, #tpu.memory_space<vmem>>, vector<8x2xf32>,
    %cst_97 = arith.constant dense<0xFF800000> : vector<8xf32>
    %278 = vector.multi_reduction <maximumf>, %276, %cst_97 [1] : vector<8x2xf32> to vector<8xf32>
    %279 = vector.shape_cast %278 : vector<8xf32> to vector<8x1xf32>
    %280 = vector.broadcast %279 : vector<8x1xf32> to vector<8x2xf32>
    %281 = arith.subf %276, %280 : vector<8x2xf32>
    %282 = math.exp %281 : vector<8x2xf32>
    %cst_98 = arith.constant dense<0.000000e+00> : vector<8xf32>
    %283 = vector.multi_reduction <add>, %282, %cst_98 [1] : vector<8x2xf32> to vector<8xf32>
    %284 = vector.shape_cast %283 : vector<8xf32> to vector<8x1xf32>
    %285 = tpu.reciprocal %284 : vector<8x1xf32> -> vector<8x1xf32>
    %286 = vector.broadcast %285 : vector<8x1xf32> to vector<8x2xf32>
    %287 = arith.mulf %282, %286 : vector<8x2xf32>
    %c0_99 = arith.constant 0 : index
    %c0_100 = arith.constant 0 : index
    %288 = vector.load %arg15[%c0_99, %c0_100] : memref<8x2xf32, #tpu.memory_space<vmem>>, vector<8x2xf32>
    tpu.vector_store %arg15[%c0_99, %c0_100], %287 {strides = array<i32>} : memref<8x2xf32, #tpu.memory_space<vmem>>, vector<8x2xf32>,
    return
  }
}

</mosaic_0001>

<bundles_post_ra>
// kernel: space_temp_gog_forward.2
= control target key start
LH: loop header
LB: loop body
LE: loop exit
PB: predicated region body
PF: predicated region fallthrough
CT: control target
= control target key end

     0   :  { %v727_v0 = vmov 0.0   ;;  %vm728_vm0 = vmmov 0   ;;  %vm373_vm1 = vcmask 1045504   ;;  %vm363_vm2 = vcmask 359424   ;;  %s931_s2 = inlined_call_operand.vmem [shape: bf16[128,64], index: 2, kind: input, shape index: {}]   ;;  %s932_s3 = inlined_call_operand.vmem [shape: bf16[300,16], index: 3, kind: input, shape index: {}]   ;;  %s933_s0 = inlined_call_operand.vmem [shape: bf16[40,128], index: 0, kind: input, shape index: {}]   ;;  %s934_s1 = inlined_call_operand.vmem [shape: bf16[40,300], index: 1, kind: input, shape index: {}]   ;;  %s935_s4 = inlined_call_operand.vmem [shape: f32[1,80], index: 4, kind: input, shape index: {}]   ;;  %s936_s5 = inlined_call_operand.vmem [shape: f32[40,80], index: 5, kind: output, shape index: {}]  }
   0x1   :  { %631 = vmatprep.subr.bf16.mxu0 %v727_v0  ;;  %v686_v1 = vld [vmem:[%s931_s2] sm:$0xff]   ;;  %647 = vmatprep.mubr.msk.bf16.mxu0 %vm728_vm0, %v727_v0  ;;  %v689_v4 = vld [vmem:[%s931_s2 + $0x8] sm:$0xff]   ;;  %v692_v7 = vld [vmem:[%s931_s2 + $0x10] sm:$0xff]   ;;  %vm509_vm3 = vcmask 523264   ;;  %vm527_vm4 = vcmask 654336  }
   0x2   :  { %v687_v2 = vld [vmem:[%s932_s3 + $0x40] sm:$0xff]   ;;  %632 = vmatpush3.bf16.msra.mxu0 %v686_v1  ;;  %v690_v5 = vld [vmem:[%s932_s3 + $0x48] sm:$0xff]   ;;  %v693_v8 = vld [vmem:[%s932_s3 + $0x50] sm:$0xff]  }
   0x3   :  { %v688_v3 = vld [vmem:[%s932_s3] sm:$0xff]   ;;  %591 = vmatprep.subr.bf16.mxu1 %v687_v2  ;;  %633 = vmatprep.subr.bf16.mxu0 %v727_v0  ;;  %v691_v6 = vld [vmem:[%s932_s3 + $0x8] sm:$0xff]   ;;  %v694_v9 = vld [vmem:[%s932_s3 + $0x10] sm:$0xff]  }
   0x4   :  { %592 = vmatpush3.bf16.msra.mxu1 %v688_v3  ;;  %v695_v10 = vld [vmem:[%s931_s2 + $0x18] sm:$0xff]   ;;  %v699_v13 = vld [vmem:[%s932_s3 + $0x60] sm:$0xff]   ;;  %v702_v16 = vld [vmem:[%s932_s3 + $0x68] sm:$0xff]  }
   0x5   :  { %593 = vmatprep.subr.bf16.mxu1 %v690_v5  ;;  %v696_v11 = vld [vmem:[%s932_s3 + $0x58] sm:$0xff]   ;;  %v698_v14 = vld [vmem:[%s931_s2 + $0x20] sm:$0xff]   ;;  %v701_v17 = vld [vmem:[%s931_s2 + $0x28] sm:$0xff]  }
   0x6   :  { %634 = vmatpush3.bf16.msra.mxu0 %v689_v4  ;;  %v697_v12 = vld [vmem:[%s932_s3 + $0x18] sm:$0xff]   ;;  %v700_v15 = vld [vmem:[%s932_s3 + $0x20] sm:$0xff]   ;;  %v703_v18 = vld [vmem:[%s932_s3 + $0x28] sm:$0xff]  }
   0x7   :  { %635 = vmatprep.subr.bf16.mxu0 %v727_v0  ;;  %v705_v19 = vld [vmem:[%s932_s3 + $0x70] sm:$0xff]   ;;  %v707_v22 = vld [vmem:[%s931_s2 + $0x38] sm:$0xff]   ;;  %v710_v26 = vld [vmem:[%s933_s0] sm:$0xff]  }
   0x8   :  { %594 = vmatpush3.bf16.msra.mxu1 %v691_v6  ;;  %v704_v20 = vld [vmem:[%s931_s2 + $0x30] sm:$0xff]   ;;  %v708_v23 = vld [vmem:[%s932_s3 + $0x78] sm:$0xff]   ;;  %v714_v27 = vld [vmem:[%s932_s3 + $0x80] sm:$0xff]  }
   0x9   :  { %595 = vmatprep.subr.bf16.mxu1 %v693_v8  ;;  %v706_v21 = vld [vmem:[%s932_s3 + $0x30] sm:$0xff]   ;;  %v709_v25 = vld [vmem:[%s932_s3 + $0x38] sm:$0xff]   ;;  %v711_v28 = vld [vmem:[%s934_s1] ss:$12 sps:$4 sm:$0xff]  }
   0xa   :  { %636 = vmatpush3.bf16.msra.mxu0 %v692_v7  ;;  %v713_v24 = vld [vmem:[%s934_s1 + $0x4] ss:$12 sps:$4 sm:$0xff]   ;;  %v716_v29 = vld [vmem:[%s934_s1 + $0x1c] ss:$12 sps:$4 sm:$0xff]   ;;  %v725_v40 = vld [vmem:[%s934_s1 + $0x20] ss:$12 sps:$4 sm:$0xff]  }
   0xb   :  { %637 = vmatprep.subr.bf16.mxu0 %v727_v0  ;;  %409 = vmatprep.mubr.bf16.mxu1 %v713_v24  ;;  %v719_v30 = vld [vmem:[%s932_s3 + $0x88] sm:$0xff]   ;;  %v723_v31 = vld [vmem:[%s932_s3 + $0x90] sm:$0x3f]   ;;  %v718_v34 = vld [vmem:[%s934_s1 + $0x18] ss:$12 sps:$4 sm:$0xff]  }
   0xc   :  { %596 = vmatpush3.bf16.msra.mxu1 %v694_v9  ;;  %v715_v32 = vld [vmem:[%s933_s0 + $0x8] sm:$0xff]   ;;  %v170_v33 = vld [vmem:[%s934_s1 + $0x30] sm:$0xff]  ;;  %v375_v35 = vsel %vm373_vm1, %v723_v31, 0  ;;  %v726_v41 = vld [vmem:[%s934_s1 + $0x38] ss:$0 sps:$4 sm:$0xff]  }
   0xd   :  { %597 = vmatprep.subr.bf16.mxu1 %v696_v11  ;;  %v555_v36 = vcombine.high %v170_v33, %v170_v33  ;;  %v720_v37 = vld [vmem:[%s933_s0 + $0x10] ss:$0 sps:$4 sm:$0xff]   ;;  %v554_v38 = vcombine.low %v170_v33, %v170_v33  ;;  %v724_v39 = vld [vmem:[%s934_s1 + $0x8] ss:$12 sps:$4 sm:$0xff]   ;;  %s729_s1 = smov 64  }
   0xe   :  { %638 = vmatpush3.bf16.msra.mxu0 %v695_v10  ;;  %v579_v24 = vld [vmem:[%s935_s4] ss:$0 sm:$0xff] }
   0xf   :  { %639 = vmatprep.subr.bf16.mxu0 %v727_v0 }
  0x10   :  { %598 = vmatpush3.bf16.msra.mxu1 %v697_v12 }
  0x11   :  { %599 = vmatprep.subr.bf16.mxu1 %v699_v13 }
  0x12   :  { %640 = vmatpush3.bf16.msra.mxu0 %v698_v14 }
  0x13   :  { %641 = vmatprep.subr.bf16.mxu0 %v727_v0 }
  0x14   :  { %600 = vmatpush3.bf16.msra.mxu1 %v700_v15 }
  0x15   :  { %601 = vmatprep.subr.bf16.mxu1 %v702_v16 }
  0x16   :  { %642 = vmatpush3.bf16.msra.mxu0 %v701_v17 }
  0x17   :  { %643 = vmatprep.subr.bf16.mxu0 %v727_v0 }
  0x18   :  { %602 = vmatpush3.bf16.msra.mxu1 %v703_v18 }
  0x19   :  { %603 = vmatprep.subr.bf16.mxu1 %v705_v19 }
  0x1a   :  { %644 = vmatpush3.bf16.msra.mxu0 %v704_v20 }
  0x1b   :  { %645 = vmatprep.subr.bf16.mxu0 %v727_v0 }
  0x1c   :  { %604 = vmatpush3.bf16.msra.mxu1 %v706_v21 }
  0x1d   :  { %605 = vmatprep.subr.bf16.mxu1 %v708_v23 }
  0x1e   :  { %646 = vmatpush3.bf16.msra.mxu0 %v707_v22 }
  0x1f   :  { %659 = vmatprep.subr.bf16.mxu0 %v727_v0 }
  0x20   :  { %606 = vmatpush3.bf16.msra.mxu1 %v709_v25 }
  0x21   :  { %648 = vmatmul.mubr.bf16.vlgmr.msra.gmra.mrb[0].mxu0 %v710_v26  ;;  %677 = vmatprep.subr.bf16.mxu1 %v727_v0 }
  0x22   :  { %660 = vmatpush3.bf16.msra.mxu0 %v714_v27  ;;  %651 = vmatprep.mubr.msk.bf16.mxu0 %vm728_vm0, %v727_v0 }
  0x23   :  { %410 = vmatmul.mubr.bf16.vlgmr.msra.gmra.mrb[0].mxu1 %v711_v28  ;;  %661 = vmatprep.subr.bf16.mxu0 %v727_v0 }
  0x24   :  { %680 = vmatpush3.bf16.msra.mxu1 %v714_v27  ;;  %417 = vmatprep.mubr.bf16.mxu1 %v716_v29 }
  0x25   :  { %678 = vmatprep.subr.bf16.mxu1 %v727_v0 }
  0x26   :  { %662 = vmatpush3.bf16.msra.mxu0 %v719_v30 }
  0x27   :  { %663 = vmatprep.subr.bf16.mxu0 %v727_v0 }
  0x28   :  { %681 = vmatpush3.bf16.msra.mxu1 %v719_v30 }
  0x29   :  { %652 = vmatmul.mubr.bf16.gmra.mrb[4].mxu0 %v715_v32  ;;  %679 = vmatprep.subr.bf16.mxu1 %v727_v0 }
  0x2a   :  { %655 = vmatprep.mubr.msk.bf16.mxu0 %vm728_vm0, %v727_v0  ;;  %664 = vmatpush3.bf16.msra.mxu0 %v375_v35 }
  0x2b   :  { %418 = vmatmul.mubr.bf16.gmra.mrb[4].mxu1 %v718_v34 }
  0x2c   :  { %425 = vmatprep.mubr.bf16.mxu1 %v555_v36  ;;  %682 = vmatpush3.bf16.msra.mxu1 %v375_v35 }
  0x31   :  { %656 = vmatmul.mubr.bf16.gmra.mrb[8].mxu0 %v720_v37 }
  0x32   :  { %665 = vmatprep.mubr.msk.bf16.mxu0 %vm728_vm0, %v727_v0 }
  0x33   :  { %426 = vmatmul.mubr.bf16.gmra.mrb[8].mxu1 %v554_v38 }
  0x34   :  { %669 = vmatprep.mubr.msk.bf16.mxu1 %vm728_vm0, %v727_v0 }
  0x39   :  { %666 = vmatmul.mubr.msk.bf16.vlgmr.msra.gmra.mrb[12].mxu0 %vm363_vm2, %v724_v39 }
  0x3b   :  { %670 = vmatmul.mubr.msk.bf16.vlgmr.msra.gmra.mrb[12].mxu1 %vm363_vm2, %v725_v40 }
  0x3c   :  { %673 = vmatprep.mubr.msk.bf16.mxu1 %vm728_vm0, %v727_v0 }
  0x43   :  { %674 = vmatmul.mubr.msk.bf16.gmra.mrb[16].mxu1 %vm363_vm2, %v726_v41 }
  0xf4   :  { %v140_v42 = vpop.f32.mrb[0].mxu0 }
  0xf5   :  { %v649_v43 = vpop.f32.mrb[1].mxu0 }
  0xf6   :  { %v607_v44 = vpop.f32.mrb[0].mxu1  ;;  %v900_v45 = vpop.f32.mrb[2].mxu0 }
  0xf7   :  { %v608_v46 = vpop.f32.mrb[1].mxu1  ;;  %v650_v47 = vpop.f32.mrb[3].mxu0 }
  0xf8   :  { %v609_v48 = vadd.f32 %v608_v46, %v607_v44  ;;  %v610_v49 = vpop.f32.mrb[2].mxu1 }
  0xf9   :  { %v611_v50 = vpop.f32.mrb[3].mxu1 }
  0xfa   :  { %v612_v51 = vadd.f32 %v611_v50, %v610_v49 }
  0xfc   :  { %v148_v52 = vpop.f32.mrb[4].mxu0 }
  0xfd   :  { %v653_v53 = vpop.f32.mrb[5].mxu0 }
  0xfe   :  { %v613_v54 = vpop.f32.mrb[4].mxu1  ;;  %v151_v55 = vpop.f32.mrb[6].mxu0 }
  0xff   :  { %v614_v56 = vpop.f32.mrb[5].mxu1  ;;  %v654_v57 = vpop.f32.mrb[7].mxu0 }
 0x100   :  { %v615_v58 = vadd.f32 %v614_v56, %v613_v54  ;;  %v616_v59 = vpop.f32.mrb[6].mxu1 }
 0x101   :  { %v617_v60 = vpop.f32.mrb[7].mxu1 }
 0x102   :  { %v618_v61 = vadd.f32 %v617_v60, %v616_v59 }
 0x104   :  { %v156_v62 = vpop.f32.mrb[8].mxu0 }
 0x105   :  { %v657_v63 = vpop.f32.mrb[9].mxu0 }
 0x106   :  { %v619_v0 = vpop.f32.mrb[8].mxu1  ;;  %v159_v1 = vpop.f32.mrb[10].mxu0 }
 0x107   :  { %v620_v2 = vpop.f32.mrb[9].mxu1  ;;  %v658_v3 = vpop.f32.mrb[11].mxu0 }
 0x108   :  { %v621_v4 = vadd.f32 %v620_v2, %v619_v0  ;;  %v622_v5 = vpop.f32.mrb[10].mxu1 }
 0x109   :  { %v623_v6 = vpop.f32.mrb[11].mxu1 }
 0x10c   :  { %v467_v7 = vpop.f32.mrb[12].mxu0 }
 0x10d   :  { %v468_v8 = vadd.f32 %v609_v48, %v467_v7  ;;  %v667_v9 = vpop.f32.mrb[13].mxu0 }
 0x10e   :  { %v475_v10 = vpop.f32.mrb[12].mxu1  ;;  %v470_v11 = vpop.f32.mrb[14].mxu0 }
 0x10f   :  { %v476_v12 = vadd.f32 %v615_v58, %v475_v10  ;;  %v471_v13 = vadd.f32 %v612_v51, %v470_v11  ;;  %v671_v14 = vpop.f32.mrb[13].mxu1  ;;  %494 = vrot.lane.b32.xlu0 %v468_v8, %s729_s1  ;;  %v668_v15 = vpop.f32.mrb[15].mxu0 }
 0x110   :  { %v478_v16 = vpop.f32.mrb[14].mxu1 }
 0x111   :  { %v479_v17 = vadd.f32 %v618_v61, %v478_v16  ;;  %v672_v18 = vpop.f32.mrb[15].mxu1  ;;  %498 = vrot.lane.b32.xlu1 %v476_v12, %s729_s1 }
 0x113   :  { %496 = vrot.lane.b32.xlu0 %v471_v13, %s729_s1 }
 0x115   :  { %500 = vrot.lane.b32.xlu1 %v479_v17, %s729_s1 }
 0x116   :  { %v483_v19 = vpop.f32.mrb[16].mxu1 }
 0x117   :  { %v484_v20 = vadd.f32 %v621_v4, %v483_v19  ;;  %v675_v21 = vpop.f32.mrb[17].mxu1 }
 0x118   :  { %v486_v22 = vpop.f32.mrb[18].mxu1 }
 0x119   :  { %v676_v23 = vpop.f32.mrb[19].mxu1  ;;  %502 = vrot.lane.b32.xlu0 %v484_v20, %s729_s1 }
 0x181   :  { %v495_v25 = vpop.permute.xlu0 %494 }
 0x182   :  { %v510_v26 = vsel %vm509_vm3, %v140_v42, %v495_v25 }
 0x183   :  { %v522_v27 = vadd.f32 %v579_v24, %v510_v26  ;;  %v499_v28 = vpop.permute.xlu1 %498 }
 0x184   :  { %v512_v29 = vsel %vm509_vm3, %v148_v52, %v499_v28 }
 0x185   :  { %528 = vst.msk [vmem:[%s936_s5] sm:$0xff] %vm527_vm4, %v522_v27  ;;  %v524_v30 = vadd.f32 %v579_v24, %v512_v29  ;;  %v497_v31 = vpop.permute.xlu0 %496 }
 0x186   :  { %v511_v32 = vsel %vm509_vm3, %v900_v45, %v497_v31 }
 0x187   :  { %530 = vst.msk [vmem:[%s936_s5 + $0x10] sm:$0xff] %vm527_vm4, %v524_v30  ;;  %v523_v33 = vadd.f32 %v579_v24, %v511_v32  ;;  %v501_v34 = vpop.permute.xlu1 %500 }
 0x188   :  { %v513_v35 = vsel %vm509_vm3, %v151_v55, %v501_v34 }
 0x189   :  { %529 = vst.msk [vmem:[%s936_s5 + $0x8] sm:$0xff] %vm527_vm4, %v523_v33  ;;  %v525_v36 = vadd.f32 %v579_v24, %v513_v35 }
 0x18b   :  { %531 = vst.msk [vmem:[%s936_s5 + $0x18] sm:$0xff] %vm527_vm4, %v525_v36  ;;  %v503_v37 = vpop.permute.xlu0 %502 }
 0x18c   :  { %v514_v38 = vsel %vm509_vm3, %v156_v62, %v503_v37 }
 0x18d   :  { %v526_v39 = vadd.f32 %v579_v24, %v514_v38 }
 0x18f   :  { %532 = vst.msk [vmem:[%s936_s5 + $0x20] sm:$0xff] %vm527_vm4, %v526_v39 }

// kernel: space_temp_gog_forward.3
= control target key start
LH: loop header
LB: loop body
LE: loop exit
PB: predicated region body
PF: predicated region fallthrough
CT: control target
= control target key end

     0   :  { %v2375_v0 = vmov 0.0   ;;  %vm3114_vm0 = vmmov 0   ;;  %vm57_vm1 = vcmask 654336   ;;  %v108_v54 = vlaneseq  ;;  %s2378_s21 = smov 16   ;;  %s3097_s5 = inlined_call_operand.vmem [shape: bf16[8,64], index: 5, kind: input, shape index: {}]   ;;  %s3098_s6 = inlined_call_operand.vmem [shape: f32[8,8], index: 6, kind: input, shape index: {}]   ;;  %s3099_s8 = inlined_call_operand.vmem [shape: bf16[32,32], index: 8, kind: input, shape index: {}]   ;;  %s3100_s9 = inlined_call_operand.vmem [shape: bf16[64,32], index: 9, kind: input, shape index: {}]   ;;  %s3101_s10 = inlined_call_operand.vmem [shape: bf16[64,64], index: 10, kind: input, shape index: {}]   ;;  %s3102_s11 = inlined_call_operand.vmem [shape: f32[32,16], index: 11, kind: input, shape index: {}]   ;;  %s3103_s12 = inlined_call_operand.vmem [shape: f32[16,2], index: 12, kind: input, shape index: {}]   ;;  %s3104_s14 = inlined_call_operand.vmem [shape: f32[8,2], index: 14, kind: output, shape index: {0}]   ;;  %s3105_s15 = inlined_call_operand.vmem [shape: f32[8,2], index: 15, kind: output, shape index: {1}]   ;;  %s3106_s7 = inlined_call_operand.vmem [shape: bf16[80,32], index: 7, kind: input, shape index: {}]   ;;  %s3107_s0 = inlined_call_operand.vmem [shape: f32[40,80], index: 0, kind: input, shape index: {}]   ;;  %s3108_s13 = inlined_call_operand.vmem [shape: f32[15,80], index: 13, kind: input, shape index: {}]   ;;  %s3109_s1 = inlined_call_operand.vmem [shape: bf16[40,40], index: 1, kind: input, shape index: {}]   ;;  %s3110_s2 = inlined_call_operand.vmem [shape: bf16[40,40], index: 2, kind: input, shape index: {}]   ;;  %s3111_s3 = inlined_call_operand.vmem [shape: s32[40,1], index: 3, kind: input, shape index: {}]   ;;  %s3112_s4 = inlined_call_operand.vmem [shape: s32[1,40], index: 4, kind: input, shape index: {}]  }
   0x1   :  { %2143 = vmatprep.subr.bf16.mxu0 %v2375_v0  ;;  %v2312_v1 = vld [vmem:[%s3106_s7] sm:$0xff]   ;;  %2153 = vmatprep.mubr.msk.bf16.mxu0 %vm3114_vm0, %v2375_v0  ;;  %v2313_v2 = vld [vmem:[%s3106_s7 + $0x8] sm:$0xff]   ;;  %v2314_v3 = vld [vmem:[%s3106_s7 + $0x10] sm:$0xff]   ;;  %vm280_vm7 = vcmask 1043456   ;;  %vm270_vm8 = vcmask 326656   ;;  %vm3113_vm9 = vcmask 130048  }
   0x2   :  { %2165 = vmatprep.subr.bf16.mxu1 %v2375_v0  ;;  %2171 = vmatprep.mubr.msk.bf16.mxu1 %vm3114_vm0, %v2375_v0  ;;  %v2483_v4 = vld [vmem:[%s3108_s13 + $0x8] sm:$0x7f]  ;;  %v52_v5 = vld [vmem:[%s3107_s0] sm:$0xff]  ;;  %v54_v7 = vld [vmem:[%s3107_s0 + $0x10] sm:$0xff]  ;;  %v2520_v56 = vshrl.u32 %v108_v54, 7  ;;  %vm3117_vm10 = vcmask 261120  }
   0x3   :  { %2144 = vmatpush3.bf16.msra.mxu0 %v2312_v1  ;;  %v53_v6 = vld [vmem:[%s3107_s0 + $0x8] sm:$0xff]  ;;  %v55_v8 = vld [vmem:[%s3107_s0 + $0x18] sm:$0xff]  ;;  %v58_v9 = vsel %vm57_vm1, %v52_v5, 0.0  ;;  %v61_v11 = vsel %vm57_vm1, %v54_v7, 0.0  ;;  %v56_v12 = vld [vmem:[%s3107_s0 + $0x20] sm:$0xff] }
   0x4   :  { %2145 = vmatprep.subr.bf16.mxu0 %v2375_v0  ;;  %v59_v10 = vsel %vm57_vm1, %v53_v6, 0.0  ;;  %v63_v14 = vsel %vm57_vm1, %v55_v8, 0.0  ;;  %v2315_v15 = vld [vmem:[%s3106_s7 + $0x18] sm:$0xff]   ;;  %v65_v17 = vsel %vm57_vm1, %v56_v12, 0.0  ;;  %v2316_v19 = vld [vmem:[%s3106_s7 + $0x20] sm:$0xff]   ;;  %v2523_v57 = vsub.s32 0, %v2520_v56 }
   0x5   :  { %v60_v13 = vadd.f32 %v59_v10, %v58_v9  ;;  %v2528_v58 = vld [vmem:[%s3108_s13] sm:$0xff]  ;;  %v119_v59 = vsub.s32 1, %v2520_v56  ;;  %s2377_s13 = smov 112  }
   0x6   :  { %v111_v60 = vrot.slane %v2528_v58, %v2523_v57 }
   0x7   :  { %2146 = vmatpush3.bf16.msra.mxu0 %v2313_v2  ;;  %v62_v16 = vadd.f32 %v61_v11, %v60_v13  ;;  %v120_v62 = vrot.slane %v2528_v58, %v119_v59 }
   0x8   :  { %2147 = vmatprep.subr.bf16.mxu0 %v2375_v0 }
   0x9   :  { %v64_v18 = vadd.f32 %v63_v14, %v62_v16 }
   0xb   :  { %2148 = vmatpush3.bf16.msra.mxu0 %v2314_v3  ;;  %v66_v20 = vadd.f32 %v65_v17, %v64_v18 }
   0xc   :  { %2149 = vmatprep.subr.bf16.mxu0 %v2375_v0 }
   0xd   :  { %v67_v21 = vrot.slane %v66_v20, 4 }
   0xf   :  { %2150 = vmatpush3.bf16.msra.mxu0 %v2315_v15  ;;  %v68_v22 = vadd.f32 %v67_v21, %v66_v20 }
  0x10   :  { %2151 = vmatprep.subr.bf16.mxu0 %v2375_v0 }
  0x11   :  { %v69_v23 = vrot.slane %v68_v22, 2 }
  0x13   :  { %2152 = vmatpush3.bf16.msra.mxu0 %v2316_v19  ;;  %v70_v24 = vadd.f32 %v69_v23, %v68_v22 }
  0x15   :  { %v71_v25 = vrot.slane %v70_v24, 1 }
  0x17   :  { %v72_v26 = vadd.f32 %v71_v25, %v70_v24 }
  0x19   :  { %v74_v27 = vmul.f32 0.025, %v72_v26 }
  0x1b   :  { %v75_v28 = vsub.f32 %v52_v5, %v74_v27  ;;  %v76_v29 = vsub.f32 %v53_v6, %v74_v27  ;;  %v77_v30 = vsub.f32 %v54_v7, %v74_v27  ;;  %v78_v31 = vsub.f32 %v55_v8, %v74_v27 }
  0x1c   :  { %v79_v32 = vsub.f32 %v56_v12, %v74_v27 }
  0x1d   :  { %v80_v33 = vmul.f32 %v75_v28, %v75_v28  ;;  %v81_v34 = vmul.f32 %v76_v29, %v76_v29  ;;  %v82_v35 = vmul.f32 %v77_v30, %v77_v30  ;;  %v83_v36 = vmul.f32 %v78_v31, %v78_v31 }
  0x1e   :  { %v84_v37 = vmul.f32 %v79_v32, %v79_v32 }
  0x1f   :  { %v85_v38 = vsel %vm57_vm1, %v80_v33, 0.0  ;;  %v86_v39 = vsel %vm57_vm1, %v81_v34, 0.0  ;;  %v88_v40 = vsel %vm57_vm1, %v82_v35, 0.0  ;;  %v90_v42 = vsel %vm57_vm1, %v83_v36, 0.0 }
  0x20   :  { %v87_v41 = vadd.f32 %v86_v39, %v85_v38  ;;  %v92_v44 = vsel %vm57_vm1, %v84_v37, 0.0 }
  0x22   :  { %v89_v43 = vadd.f32 %v88_v40, %v87_v41 }
  0x24   :  { %v91_v45 = vadd.f32 %v90_v42, %v89_v43 }
  0x26   :  { %v93_v46 = vadd.f32 %v92_v44, %v91_v45  ;;  %v2317_v45 = vld [vmem:[%s3109_s1] sm:$0xff]  }
  0x28   :  { %v94_v47 = vrot.slane %v93_v46, 4 }
  0x2a   :  { %v95_v48 = vadd.f32 %v94_v47, %v93_v46  ;;  %v2318_v46 = vld [vmem:[%s3109_s1 + $0x8] sm:$0xff]   ;;  %v2319_v47 = vld [vmem:[%s3109_s1 + $0x10] ss:$0 sps:$4 sm:$0xff]  }
  0x2c   :  { %v96_v49 = vrot.slane %v95_v48, 2 }
  0x2e   :  { %v97_v50 = vadd.f32 %v96_v49, %v95_v48 }
  0x30   :  { %v98_v51 = vrot.slane %v97_v50, 1 }
  0x32   :  { %v99_v52 = vadd.f32 %v98_v51, %v97_v50 }
  0x34   :  { %v100_v53 = vmul.f32 0.025, %v99_v52  ;;  %v2320_v52 = vld [vmem:[%s3110_s2] sm:$0xff]  }
  0x36   :  { %v101_v55 = vadd.f32 1e-05, %v100_v53  ;;  %v2321_v53 = vld [vmem:[%s3110_s2 + $0x8] sm:$0xff]  }
  0x38   :  { %2323 = vrsqrt.f32 %v101_v55  ;;  %v2322_v55 = vld [vmem:[%s3110_s2 + $0x10] ss:$0 sps:$4 sm:$0xff]  }
  0x42   :  { %v2324_v61 = vpop.eup %2323 }
  0x43   :  { %v103_v63 = vmul.f32 %v2324_v61, %v75_v28  ;;  %v104_v1 = vmul.f32 %v2324_v61, %v76_v29  ;;  %v105_v2 = vmul.f32 %v2324_v61, %v77_v30  ;;  %v106_v3 = vmul.f32 %v2324_v61, %v78_v31 }
  0x44   :  { %v107_v9 = vmul.f32 %v2324_v61, %v79_v32 }
  0x45   :  { %v112_v5 = vmul.f32 %v111_v60, %v103_v63  ;;  %v113_v6 = vmul.f32 %v111_v60, %v104_v1  ;;  %v114_v7 = vmul.f32 %v111_v60, %v105_v2  ;;  %v115_v8 = vmul.f32 %v111_v60, %v106_v3 }
  0x46   :  { %v116_v16 = vmul.f32 %v111_v60, %v107_v9 }
  0x47   :  { %v121_v10 = vadd.f32 %v120_v62, %v112_v5  ;;  %v122_v11 = vadd.f32 %v120_v62, %v113_v6  ;;  %v123_v12 = vadd.f32 %v120_v62, %v114_v7  ;;  %v124_v13 = vadd.f32 %v120_v62, %v115_v8 }
  0x48   :  { %v125_v24 = vadd.f32 %v120_v62, %v116_v16 }
  0x49   :  { %vm126_vm2 = vcmp.gt.f32.partialorder %v121_v10, 0.0  ;;  %vm127_vm3 = vcmp.gt.f32.partialorder %v122_v11, 0.0  ;;  %v131_v14 = vmul.f32 0.2, %v121_v10  ;;  %v132_v15 = vmul.f32 0.2, %v122_v11 }
  0x4a   :  { %v133_v19 = vmul.f32 0.2, %v123_v12  ;;  %v134_v20 = vmul.f32 0.2, %v124_v13  ;;  %vm128_vm4 = vcmp.gt.f32.partialorder %v123_v12, 0.0  ;;  %vm129_vm5 = vcmp.gt.f32.partialorder %v124_v13, 0.0 }
  0x4b   :  { %v136_v17 = vsel %vm126_vm2, %v121_v10, %v131_v14  ;;  %v137_v18 = vsel %vm127_vm3, %v122_v11, %v132_v15  ;;  %v135_v26 = vmul.f32 0.2, %v125_v24  ;;  %vm130_vm6 = vcmp.gt.f32.partialorder %v125_v24, 0.0 }
  0x4c   :  { %v141_v21 = vpack.c.bf16 %v137_v18, %v136_v17  ;;  %v138_v22 = vsel %vm128_vm4, %v123_v12, %v133_v19  ;;  %v139_v23 = vsel %vm129_vm5, %v124_v13, %v134_v20  ;;  %vm561_vm2 = vcmask 7168  }
  0x4d   :  { %v142_v25 = vpack.c.bf16 %v139_v23, %v138_v22  ;;  %v140_v27 = vsel %vm130_vm6, %v125_v24, %v135_v26  ;;  %v465_v22 = vsub.s32 2, %v2520_v56  ;;  %vm2276_vm3 = vmpackc.low %vm561_vm2, %vm561_vm2 }
  0x4e   :  { %2154 = vmatmul.mubr.msk.bf16.vlgmr.msra.gmra.mrb[0].mxu0 %vm57_vm1, %v141_v21  ;;  %v143_v28 = vpack.c.bf16 %v140_v27, %v140_v27 }
  0x4f   :  { %2157 = vmatprep.mubr.msk.bf16.mxu0 %vm3114_vm0, %v2375_v0  ;;  %v466_v23 = vrot.slane %v2528_v58, %v465_v22 }
  0x56   :  { %2158 = vmatmul.mubr.msk.bf16.gmra.mrb[4].mxu0 %vm57_vm1, %v142_v25 }
  0x57   :  { %2161 = vmatprep.mubr.msk.bf16.mxu0 %vm3114_vm0, %v2375_v0 }
  0x5e   :  { %2162 = vmatmul.mubr.msk.bf16.gmra.mrb[8].mxu0 %vm57_vm1, %v143_v28  ;;  %vm3116_vm1 = vcmask 253952  }
  0x5f   :  { %2211 = vmatprep.mubr.msk.f32.mxu0 %vm3114_vm0, %v2375_v0 }
 0x121   :  { %v227_v29 = vpop.f32.mrb[0].mxu0 }
 0x122   :  { %v2155_v30 = vpop.f32.mrb[1].mxu0 }
 0x123   :  { %v230_v31 = vpop.f32.mrb[2].mxu0 }
 0x124   :  { %v254_v32 = vpack.c.bf16 %v230_v31, %v227_v29  ;;  %v2156_v33 = vpop.f32.mrb[3].mxu0 }
 0x126   :  { %361 = vrot.lane.b32.xlu0 %v254_v32, %s2377_s13  ;;  %2166 = vmatpush3.bf16.msra.mxu1 %v254_v32 }
 0x127   :  { %2167 = vmatprep.subr.bf16.mxu1 %v2375_v0 }
 0x129   :  { %v235_v34 = vpop.f32.mrb[4].mxu0 }
 0x12a   :  { %v2159_v35 = vpop.f32.mrb[5].mxu0 }
 0x12b   :  { %v238_v36 = vpop.f32.mrb[6].mxu0 }
 0x12c   :  { %v255_v37 = vpack.c.bf16 %v238_v36, %v235_v34  ;;  %v2160_v38 = vpop.f32.mrb[7].mxu0 }
 0x12e   :  { %363 = vrot.lane.b32.xlu0 %v255_v37, %s2377_s13  ;;  %2168 = vmatpush3.bf16.msra.mxu1 %v255_v37 }
 0x12f   :  { %2169 = vmatprep.subr.bf16.mxu1 %v2375_v0 }
 0x131   :  { %v243_v39 = vpop.f32.mrb[8].mxu0 }
 0x132   :  { %v256_v40 = vpack.c.bf16 %v243_v39, %v243_v39  ;;  %v2163_v41 = vpop.f32.mrb[9].mxu0 }
 0x133   :  { %v246_v42 = vpop.f32.mrb[10].mxu0 }
 0x134   :  { %365 = vrot.lane.b32.xlu1 %v256_v40, %s2377_s13  ;;  %v2164_v43 = vpop.f32.mrb[11].mxu0  ;;  %v282_v44 = vsel %vm280_vm7, %v256_v40, 0 }
 0x135   :  { %2170 = vmatpush3.bf16.msra.mxu1 %v282_v44 }
 0x136   :  { %2183 = vmatprep.subr.bf16.mxu1 %v2375_v0 }
 0x138   :  { %2172 = vmatmul.mubr.msk.bf16.vlgmr.msra.gmra.mrb[0].mxu1 %vm270_vm8, %v2317_v45 }
 0x139   :  { %2175 = vmatprep.mubr.msk.bf16.mxu1 %vm3114_vm0, %v2375_v0 }
 0x140   :  { %2176 = vmatmul.mubr.msk.bf16.gmra.mrb[4].mxu1 %vm270_vm8, %v2318_v46 }
 0x141   :  { %2179 = vmatprep.mubr.msk.bf16.mxu1 %vm3114_vm0, %v2375_v0 }
 0x148   :  { %2180 = vmatmul.mubr.msk.bf16.gmra.mrb[8].mxu1 %vm270_vm8, %v2319_v47 }
 0x149   :  { %2189 = vmatprep.mubr.msk.bf16.mxu1 %vm3114_vm0, %v2375_v0 }
 0x198   :  { %v362_v48 = vpop.permute.xlu0 %361 }
 0x199   :  { %2184 = vmatpush3.bf16.msra.mxu1 %v362_v48 }
 0x19a   :  { %2185 = vmatprep.subr.bf16.mxu1 %v2375_v0 }
 0x1a0   :  { %v364_v49 = vpop.permute.xlu0 %363 }
 0x1a1   :  { %2186 = vmatpush3.bf16.msra.mxu1 %v364_v49 }
 0x1a2   :  { %2187 = vmatprep.subr.bf16.mxu1 %v2375_v0 }
 0x1a6   :  { %v366_v50 = vpop.permute.xlu1 %365 }
 0x1a7   :  { %v379_v51 = vsel %vm280_vm7, %v366_v50, 0 }
 0x1a8   :  { %2188 = vmatpush3.bf16.msra.mxu1 %v379_v51 }
 0x1ab   :  { %2190 = vmatmul.mubr.msk.bf16.vlgmr.msra.gmra.mrb[12].mxu1 %vm270_vm8, %v2320_v52 }
 0x1ac   :  { %2193 = vmatprep.mubr.msk.bf16.mxu1 %vm3114_vm0, %v2375_v0 }
 0x1b3   :  { %2194 = vmatmul.mubr.msk.bf16.gmra.mrb[16].mxu1 %vm270_vm8, %v2321_v53 }
 0x1b4   :  { %2197 = vmatprep.mubr.msk.bf16.mxu1 %vm3114_vm0, %v2375_v0 }
 0x1bb   :  { %2198 = vmatmul.mubr.msk.bf16.gmra.mrb[20].mxu1 %vm270_vm8, %v2322_v55 }
 0x20b   :  { %v318_v60 = vpop.f32.mrb[0].mxu1 }
 0x20c   :  { %v2173_v61 = vpop.f32.mrb[1].mxu1 }
 0x20d   :  { %v321_v62 = vpop.f32.mrb[2].mxu1 }
 0x20e   :  { %v2174_v63 = vpop.f32.mrb[3].mxu1 }
 0x213   :  { %v326_v1 = vpop.f32.mrb[4].mxu1 }
 0x214   :  { %v2177_v2 = vpop.f32.mrb[5].mxu1 }
 0x215   :  { %v329_v3 = vpop.f32.mrb[6].mxu1 }
 0x216   :  { %v2178_v5 = vpop.f32.mrb[7].mxu1 }
 0x21b   :  { %v334_v6 = vpop.f32.mrb[8].mxu1 }
 0x21c   :  { %v2181_v7 = vpop.f32.mrb[9].mxu1 }
 0x21d   :  { %v337_v8 = vpop.f32.mrb[10].mxu1 }
 0x21e   :  { %v2182_v9 = vpop.f32.mrb[11].mxu1 }
 0x27e   :  { %v415_v10 = vpop.f32.mrb[12].mxu1 }
 0x27f   :  { %442 = vrot.lane.b32.xlu1 %v415_v10, %s2378_s21  ;;  %v2191_v11 = vpop.f32.mrb[13].mxu1 }
 0x280   :  { %v418_v12 = vpop.f32.mrb[14].mxu1 }
 0x281   :  { %444 = vrot.lane.b32.xlu0 %v418_v12, %s2378_s21  ;;  %v2192_v13 = vpop.f32.mrb[15].mxu1 }
 0x286   :  { %v423_v14 = vpop.f32.mrb[16].mxu1 }
 0x287   :  { %446 = vrot.lane.b32.xlu1 %v423_v14, %s2378_s21  ;;  %v2195_v15 = vpop.f32.mrb[17].mxu1 }
 0x288   :  { %v426_v16 = vpop.f32.mrb[18].mxu1 }
 0x289   :  { %448 = vrot.lane.b32.xlu0 %v426_v16, %s2378_s21  ;;  %v2196_v17 = vpop.f32.mrb[19].mxu1 }
 0x28e   :  { %v431_v18 = vpop.f32.mrb[20].mxu1 }
 0x28f   :  { %450 = vrot.lane.b32.xlu1 %v431_v18, %s2378_s21  ;;  %v2199_v19 = vpop.f32.mrb[21].mxu1 }
 0x290   :  { %v434_v20 = vpop.f32.mrb[22].mxu1 }
 0x291   :  { %v2200_v21 = vpop.f32.mrb[23].mxu1 }
 0x2f1   :  { %v443_v24 = vpop.permute.xlu1 %442 }
 0x2f2   :  { %v458_v25 = vsel %vm3113_vm9, %v318_v60, %v443_v24 }
 0x2f3   :  { %v467_v26 = vadd.f32 %v466_v23, %v458_v25  ;;  %v445_v27 = vpop.permute.xlu0 %444 }
 0x2f4   :  { %v459_v28 = vsel %vm3113_vm9, %v321_v62, %v445_v27 }
 0x2f5   :  { %v468_v29 = vadd.f32 %v466_v23, %v459_v28  ;;  %v473_v30 = vsel %vm3117_vm10, %v467_v26, 0.0 }
 0x2f7   :  { %v474_v31 = vsel %vm3117_vm10, %v468_v29, 0.0 }
 0x2f8   :  { %v475_v32 = vadd.f32 %v474_v31, %v473_v30 }
 0x2f9   :  { %v447_v33 = vpop.permute.xlu1 %446 }
 0x2fa   :  { %v460_v34 = vsel %vm3113_vm9, %v326_v1, %v447_v33 }
 0x2fb   :  { %v469_v35 = vadd.f32 %v466_v23, %v460_v34  ;;  %v449_v36 = vpop.permute.xlu0 %448 }
 0x2fc   :  { %v461_v37 = vsel %vm3113_vm9, %v329_v3, %v449_v36 }
 0x2fd   :  { %v476_v38 = vsel %vm3117_vm10, %v469_v35, 0.0  ;;  %v470_v39 = vadd.f32 %v466_v23, %v461_v37 }
 0x2fe   :  { %v477_v40 = vadd.f32 %v476_v38, %v475_v32 }
 0x2ff   :  { %v478_v41 = vsel %vm3117_vm10, %v470_v39, 0.0 }
 0x300   :  { %v479_v42 = vadd.f32 %v478_v41, %v477_v40 }
 0x301   :  { %v451_v43 = vpop.permute.xlu1 %450 }
 0x302   :  { %v462_v44 = vsel %vm3113_vm9, %v334_v6, %v451_v43 }
 0x303   :  { %v471_v45 = vadd.f32 %v466_v23, %v462_v44 }
 0x305   :  { %v480_v46 = vsel %vm3117_vm10, %v471_v45, 0.0 }
 0x306   :  { %v481_v47 = vadd.f32 %v480_v46, %v479_v42 }
 0x308   :  { %v482_v48 = vrot.slane %v481_v47, 4 }
 0x30a   :  { %v483_v49 = vadd.f32 %v482_v48, %v481_v47 }
 0x30c   :  { %v484_v50 = vrot.slane %v483_v49, 2 }
 0x30e   :  { %v485_v51 = vadd.f32 %v484_v50, %v483_v49  ;;  %v650_v50 = vmul.f32 %v2528_v58, %v2528_v58 }
 0x310   :  { %v486_v52 = vrot.slane %v485_v51, 1 }
 0x312   :  { %v487_v53 = vadd.f32 %v486_v52, %v485_v51 }
 0x314   :  { %v488_v55 = vmul.f32 0.025, %v487_v53 }
 0x316   :  { %v489_v60 = vsub.f32 %v467_v26, %v488_v55  ;;  %v490_v61 = vsub.f32 %v468_v29, %v488_v55  ;;  %v491_v62 = vsub.f32 %v469_v35, %v488_v55  ;;  %v492_v63 = vsub.f32 %v470_v39, %v488_v55 }
 0x317   :  { %v493_v1 = vsub.f32 %v471_v45, %v488_v55  ;;  %v539_v26 = vsub.s32 3, %v2520_v56  ;;  %v652_v55 = vrot.slane %v650_v50, 3 }
 0x318   :  { %v494_v2 = vmul.f32 %v489_v60, %v489_v60  ;;  %v495_v3 = vmul.f32 %v490_v61, %v490_v61  ;;  %v496_v5 = vmul.f32 %v491_v62, %v491_v62  ;;  %v497_v6 = vmul.f32 %v492_v63, %v492_v63 }
 0x319   :  { %v498_v10 = vmul.f32 %v493_v1, %v493_v1  ;;  %v540_v32 = vrot.slane %v2528_v58, %v539_v26 }
 0x31a   :  { %v499_v7 = vsel %vm3117_vm10, %v494_v2, 0.0  ;;  %v500_v8 = vsel %vm3117_vm10, %v495_v3, 0.0  ;;  %v502_v11 = vsel %vm3117_vm10, %v496_v5, 0.0  ;;  %v504_v13 = vsel %vm3117_vm10, %v497_v6, 0.0  ;;  %v2650_v2 = vld [vmem:[%s3111_s3 + $0x10] sm:$0xff]  ;;  %v2656_v3 = vld [vmem:[%s3111_s3 + $0x18] sm:$0xff] }
 0x31b   :  { %v501_v9 = vadd.f32 %v500_v8, %v499_v7  ;;  %v506_v15 = vsel %vm3117_vm10, %v498_v10, 0.0  ;;  %v2662_v5 = vld [vmem:[%s3111_s3 + $0x20] sm:$0xff]  ;;  %v2668_v6 = vld [vmem:[%s3111_s3 + $0x8] sm:$0xff] }
 0x31d   :  { %v503_v12 = vadd.f32 %v502_v11, %v501_v9 }
 0x31f   :  { %v505_v14 = vadd.f32 %v504_v13, %v503_v12 }
 0x321   :  { %v507_v16 = vadd.f32 %v506_v15, %v505_v14 }
 0x323   :  { %v508_v17 = vrot.slane %v507_v16, 4 }
 0x325   :  { %v509_v18 = vadd.f32 %v508_v17, %v507_v16 }
 0x327   :  { %v510_v19 = vrot.slane %v509_v18, 2 }
 0x329   :  { %v511_v20 = vadd.f32 %v510_v19, %v509_v18 }
 0x32b   :  { %v512_v21 = vrot.slane %v511_v20, 1 }
 0x32d   :  { %v513_v23 = vadd.f32 %v512_v21, %v511_v20  ;;  %v2381_v20 = vmov 1.0  }
 0x32f   :  { %v514_v24 = vmul.f32 0.025, %v513_v23 }
 0x331   :  { %v515_v25 = vadd.f32 1e-05, %v514_v24  ;;  %v2695_v24 = vld [vmem:[%s3112_s4] ss:$0 sm:$0xff]  ;;  %s2821_s4 = smov 0  }
 0x333   :  { %2325 = vrsqrt.f32 %v515_v25 }
 0x33d   :  { %v2326_v27 = vpop.eup %2325 }
 0x33e   :  { %v521_v28 = vmul.f32 %v2326_v27, %v493_v1  ;;  %v518_v29 = vmul.f32 %v2326_v27, %v490_v61  ;;  %v517_v30 = vmul.f32 %v2326_v27, %v489_v60  ;;  %v519_v31 = vmul.f32 %v2326_v27, %v491_v62  ;;  %v2644_v1 = vld [vmem:[%s3111_s3] sm:$0xff] }
 0x33f   :  { %v520_v33 = vmul.f32 %v2326_v27, %v492_v63  ;;  %v655_v61 = vsel %vm3116_vm1, %v652_v55, 0.0  ;;  %v2379_v62 = vmov 0.0|0.0   ;;  %v2380_v63 = vmov 0  }
 0x340   :  { %vm523_vm11 = vcmp.gt.f32.partialorder %v518_v29, 0.0  ;;  %v528_v34 = vmul.f32 0.2, %v518_v29  ;;  %vm522_vm12 = vcmp.gt.f32.partialorder %v517_v30, 0.0  ;;  %v527_v35 = vmul.f32 0.2, %v517_v30  ;;  %2274 = vmatprep.subr.bf16.mxu0 %v2379_v62  ;;  %2310 = vset.pattern.permute.xlu1 %v2380_v63 }
 0x341   :  { %vm526_vm13 = vcmp.gt.f32.partialorder %v521_v28, 0.0  ;;  %v531_v36 = vmul.f32 0.2, %v521_v28  ;;  %vm524_vm14 = vcmp.gt.f32.partialorder %v519_v31, 0.0  ;;  %v529_v37 = vmul.f32 0.2, %v519_v31  ;;  %2311 = vset.pattern.permute.xlu0 %v2380_v63 }
 0x342   :  { %v2617_v38 = vsel %vm523_vm11, %v518_v29, %v528_v34  ;;  %v2619_v39 = vsel %vm522_vm12, %v517_v30, %v527_v35  ;;  %vm525_vm15 = vcmp.gt.f32.partialorder %v520_v33, 0.0  ;;  %v530_v40 = vmul.f32 0.2, %v520_v33 }
 0x343   :  { %v542_v41 = vmul.f32 %v540_v32, %v2617_v38  ;;  %v541_v42 = vmul.f32 %v540_v32, %v2619_v39  ;;  %v2623_v43 = vsel %vm526_vm13, %v521_v28, %v531_v36  ;;  %v2625_v44 = vsel %vm524_vm14, %v519_v31, %v529_v37 }
 0x344   :  { %v545_v47 = vmul.f32 %v540_v32, %v2623_v43  ;;  %v543_v48 = vmul.f32 %v540_v32, %v2625_v44  ;;  %v2631_v49 = vsel %vm525_vm15, %v520_v33, %v530_v40 }
 0x345   :  { %v549_v45 = vsel %vm3117_vm10, %v542_v41, 0.0  ;;  %v546_v46 = vsel %vm3117_vm10, %v541_v42, 0.0  ;;  %v544_v53 = vmul.f32 %v540_v32, %v2631_v49 }
 0x346   :  { %550 = vadd.xlane.f32.xlu1 %v549_v45  ;;  %547 = vadd.xlane.f32.xlu0 %v546_v46  ;;  %v558_v51 = vsel %vm3117_vm10, %v545_v47, 0.0  ;;  %v552_v52 = vsel %vm3117_vm10, %v543_v48, 0.0 }
 0x347   :  { %v555_v60 = vsel %vm3117_vm10, %v544_v53, 0.0 }
 0x34a   :  { %559 = vadd.xlane.f32.xlu1 %v558_v51  ;;  %553 = vadd.xlane.f32.xlu0 %v552_v52 }
 0x34e   :  { %556 = vadd.xlane.f32.xlu0 %v555_v60 }
 0x352   :  { %656 = vadd.xlane.f32.xlu0 %v655_v61 }
 0x35b   :  { %684 = vperm.xlu1 %2310, %v2644_v1  }
 0x35f   :  { %690 = vperm.xlu1 %2310, %v2650_v2  }
 0x363   :  { %693 = vperm.xlu1 %2310, %v2656_v3  }
 0x367   :  { %696 = vperm.xlu1 %2310, %v2662_v5  }
 0x368   :  { %687 = vperm.xlu0 %2311, %v2668_v6  }
 0x3d3   :  { %v2671_v7 = vpop.xlane.xlu1 %550  ;;  %v2673_v8 = vpop.xlane.xlu0 %547 }
 0x3d4   :  { %v2275_v9 = vpack.c.bf16 %v2671_v7, %v2673_v8 }
 0x3d6   :  { %2277 = vmatpush3.bf16.xpose.msk.msra.mxu0 %vm2276_vm3, %v2275_v9 }
 0x3d7   :  { %v2679_v10 = vpop.xlane.xlu0 %553  ;;  %2278 = vmatprep.subr.bf16.mxu0 %v2379_v62  ;;  %v2687_v17 = vpop.xlane.xlu1 %559 }
 0x3db   :  { %v2682_v11 = vpop.xlane.xlu0 %556  ;;  %v2697_v27 = vpop.permute.xlu1 %684 }
 0x3dc   :  { %v2279_v12 = vpack.c.bf16 %v2682_v11, %v2679_v10  ;;  %vm702_vm4 = vcmp.eq.s32.totalorder %v2697_v27, %v2695_v24 }
 0x3dd   :  { %v769_v33 = vsel %vm702_vm4, 1.0, %v2375_v0 }
 0x3de   :  { %2281 = vmatpush3.bf16.xpose.msk.msra.mxu0 %vm2276_vm3, %v2279_v12  ;;  %v774_v34 = vsel %vm270_vm8, %v769_v33, 0.0 }
 0x3df   :  { %v657_v13 = vpop.xlane.xlu0 %656  ;;  %2209 = vmatprep.subr.mxu0 %v2375_v0  ;;  %v2711_v35 = vpop.permute.xlu1 %690  ;;  %775 = vadd.xlane.f32.xlu1 %v774_v34 }
 0x3e0   :  { %v658_v14 = vrot.slane %v657_v13, 4  ;;  %vm3119_vm5 = vcmp.eq.s32.totalorder %v2711_v35, %v2695_v24 }
 0x3e1   :  { %v771_v36 = vsel %vm3119_vm5, 1.0, %v2375_v0 }
 0x3e2   :  { %v659_v15 = vadd.f32 %v658_v14, %v657_v13  ;;  %v780_v37 = vsel %vm270_vm8, %v771_v36, 0.0  ;;  %v2756_v13 = vand.u32 127, %v108_v54  ;;  %v710_v54 = vadd.s32 16, %v2520_v56 }
 0x3e3   :  { %v694_v40 = vpop.permute.xlu1 %693  ;;  %781 = vadd.xlane.f32.xlu1 %v780_v37 }
 0x3e4   :  { %v660_v16 = vrot.slane %v659_v15, 2  ;;  %vm705_vm6 = vcmp.eq.s32.totalorder %v694_v40, %v2695_v24  ;;  %vm729_vm3 = vcmp.lt.s32.totalorder %v2756_v13, %v2520_v56 }
 0x3e5   :  { %v772_v41 = vsel %vm705_vm6, 1.0, %v2375_v0 }
 0x3e6   :  { %2210 = vmatpush3.xpose.msk.msra.mxu0 %vm561_vm2, %v2687_v17  ;;  %v661_v18 = vadd.f32 %v660_v16, %v659_v15  ;;  %v783_v42 = vsel %vm270_vm8, %v772_v41, 0.0  ;;  %v711_v15 = vadd.s32 24, %v2520_v56 }
 0x3e7   :  { %v2725_v45 = vpop.permute.xlu1 %696  ;;  %784 = vadd.xlane.f32.xlu1 %v783_v42  ;;  %v688_v9 = vpop.permute.xlu0 %687 }
 0x3e8   :  { %v662_v19 = vrot.slane %v661_v18, 1  ;;  %vm3118_vm7 = vcmp.eq.s32.totalorder %v2725_v45, %v2695_v24  ;;  %vm703_vm11 = vcmp.eq.s32.totalorder %v688_v9, %v2695_v24 }
 0x3e9   :  { %2212 = vmatmul.mubr.msk.f32.vlgmr.msra.gmra.mrb[12].mxu0 %vm561_vm2, %v2381_v20  ;;  %v773_v50 = vsel %vm3118_vm7, 1.0, %v2375_v0 }
 0x3ea   :  { %v663_v21 = vadd.f32 %v662_v19, %v661_v18  ;;  %v786_v53 = vsel %vm270_vm8, %v773_v50, 0.0 }
 0x3eb   :  { %787 = vadd.xlane.f32.xlu1 %v786_v53 }
 0x3ec   :  { %2291 = vpush %v663_v21 }
 0x41d   :  { %s2292_s3 = spop %2291 }
 0x41e   :  { %v665_v23 = vstv %s2292_s3 }
 0x41f   :  { %2327 = vrsqrt.f32 %v665_v23 }
 0x429   :  { %v2328_v25 = vpop.eup %2327 }
 0x42a   :  { %v667_v28 = vmul.f32 %v2328_v25, %v2673_v8  ;;  %v668_v29 = vmul.f32 %v2328_v25, %v2671_v7  ;;  %v669_v30 = vmul.f32 %v2328_v25, %v2679_v10  ;;  %v670_v31 = vmul.f32 %v2328_v25, %v2682_v11 }
 0x42b   :  { %v671_v32 = vmul.f32 %v2328_v25, %v2687_v17 }
 0x42c   :  { %2329 = vtanh.f32 %v667_v28 }
 0x42d   :  { %2331 = vtanh.f32 %v668_v29 }
 0x42e   :  { %2333 = vtanh.f32 %v669_v30 }
 0x42f   :  { %2335 = vtanh.f32 %v670_v31 }
 0x430   :  { %2337 = vtanh.f32 %v671_v32 }
 0x436   :  { %v2330_v46 = vpop.eup %2329 }
 0x437   :  { %v2332_v47 = vpop.eup %2331  ;;  %v2730_v48 = vmul.f32 %v2330_v46, %v2619_v39 }
 0x438   :  { %v2334_v51 = vpop.eup %2333  ;;  %v2737_v52 = vmul.f32 %v2332_v47, %v2617_v38  ;;  %v770_v38 = vsel %vm703_vm11, 1.0, %v2375_v0 }
 0x439   :  { %v2336_v55 = vpop.eup %2335  ;;  %v2741_v60 = vmul.f32 %v2334_v51, %v2625_v44  ;;  %v777_v12 = vsel %vm270_vm8, %v770_v38, 0.0  ;;  %v709_v44 = vadd.s32 8, %v2520_v56 }
 0x43a   :  { %v2338_v61 = vpop.eup %2337  ;;  %v2744_v63 = vmul.f32 %v2336_v55, %v2631_v49  ;;  %778 = vadd.xlane.f32.xlu0 %v777_v12 }
 0x43b   :  { %v2747_v39 = vmul.f32 %v2338_v61, %v2623_v43  ;;  %vm730_vm12 = vcmp.lt.s32.totalorder %v2756_v13, %v709_v44 }
 0x46c   :  { %v776_v25 = vpop.xlane.xlu1 %775 }
 0x46d   :  { %v789_v32 = vmul.f32 0.8, %v776_v25 }
 0x470   :  { %v782_v27 = vpop.xlane.xlu1 %781 }
 0x471   :  { %v791_v40 = vmul.f32 0.8, %v782_v27 }
 0x473   :  { %v796_v47 = vceil.f32 %v791_v40 }
 0x474   :  { %v785_v29 = vpop.xlane.xlu1 %784 }
 0x478   :  { %v788_v33 = vpop.xlane.xlu1 %787 }
 0x479   :  { %v793_v50 = vmul.f32 0.8, %v788_v33 }
 0x47b   :  { %v798_v55 = vceil.f32 %v793_v50 }
 0x4bc   :  { %v646_v49 = vpop.f32.mrb[12].mxu0 }
 0x4bd   :  { %v718_v14 = vrot.slane %v646_v49, %v2523_v57  ;;  %v2213_v43 = vpop.f32.mrb[13].mxu0 }
 0x4bf   :  { %vm720_vm13 = vcmp.gt.f32.partialorder %v718_v14, %v2671_v7  ;;  %vm725_vm14 = vcmp.eq.f32.partialorder %v718_v14, %v2671_v7  ;;  %vm724_vm2 = vcmp.eq.f32.partialorder %v718_v14, %v2673_v8  ;;  %vm719_vm0 = vcmp.gt.f32.partialorder %v718_v14, %v2673_v8 }
 0x4c0   :  { %vm735_vm15 = vmand %vm725_vm14, %vm730_vm12  ;;  %vm727_vm7 = vcmp.eq.f32.partialorder %v718_v14, %v2682_v11  ;;  %vm732_vm12 = vcmp.lt.s32.totalorder %v2756_v13, %v711_v15  ;;  %vm722_vm5 = vcmp.gt.f32.partialorder %v718_v14, %v2682_v11  ;;  %v712_v8 = vadd.s32 32, %v2520_v56 }
 0x4c1   :  { %vm740_vm9 = vmor %vm720_vm13, %vm735_vm15 }
 0x4c2   :  { %vm745_vm1 = vmand %vm740_vm9, %vm703_vm11  ;;  %vm731_vm11 = vcmp.lt.s32.totalorder %v2756_v13, %v710_v54 }
 0x4c3   :  { %v750_v16 = vsel %vm745_vm1, 1.0, %v2375_v0  ;;  %vm734_vm10 = vmand %vm724_vm2, %vm729_vm3  ;;  %vm726_vm1 = vcmp.eq.f32.partialorder %v718_v14, %v2679_v10  ;;  %vm728_vm2 = vcmp.eq.f32.partialorder %v718_v14, %v2687_v17 }
 0x4c4   :  { %v757_v7 = vsel %vm270_vm8, %v750_v16, 0.0  ;;  %vm739_vm14 = vmor %vm719_vm0, %vm734_vm10  ;;  %vm721_vm0 = vcmp.gt.f32.partialorder %v718_v14, %v2679_v10 }
 0x4c5   :  { %758 = vadd.xlane.f32.xlu0 %v757_v7  ;;  %vm744_vm13 = vmand %vm739_vm14, %vm702_vm4 }
 0x4c6   :  { %v749_v18 = vsel %vm744_vm13, 1.0, %v2375_v0  ;;  %vm737_vm9 = vmand %vm727_vm7, %vm732_vm12  ;;  %vm733_vm7 = vcmp.lt.s32.totalorder %v2756_v13, %v712_v8  ;;  %vm723_vm12 = vcmp.gt.f32.partialorder %v718_v14, %v2687_v17 }
 0x4c7   :  { %v754_v19 = vsel %vm270_vm8, %v749_v18, 0.0  ;;  %vm742_vm15 = vmor %vm722_vm5, %vm737_vm9  ;;  %vm3120_vm5 = vcmp.eq.s32.totalorder %v2711_v35, %v2695_v24  ;;  %vm3121_vm9 = vcmp.eq.s32.totalorder %v2725_v45, %v2695_v24  ;;  %v779_v28 = vpop.xlane.xlu0 %778  ;;  %v792_v35 = vmul.f32 0.8, %v785_v29 }
 0x4c8   :  { %755 = vadd.xlane.f32.xlu1 %v754_v19  ;;  %vm747_vm10 = vmand %vm742_vm15, %vm705_vm6  ;;  %v790_v30 = vmul.f32 0.8, %v779_v28  ;;  %v794_v24 = vceil.f32 %v789_v32 }
 0x4c9   :  { %v752_v11 = vsel %vm747_vm10, 1.0, %v2375_v0  ;;  %vm736_vm4 = vmand %vm726_vm1, %vm731_vm11  ;;  %v797_v42 = vceil.f32 %v792_v35 }
 0x4ca   :  { %v763_v20 = vsel %vm270_vm8, %v752_v11, 0.0  ;;  %vm741_vm3 = vmor %vm721_vm0, %vm736_vm4  ;;  %v795_v31 = vceil.f32 %v790_v30 }
 0x4cb   :  { %764 = vadd.xlane.f32.xlu0 %v763_v20  ;;  %vm746_vm14 = vmand %vm741_vm3, %vm3120_vm5 }
 0x4cc   :  { %v751_v10 = vsel %vm746_vm14, 1.0, %v2375_v0  ;;  %vm738_vm6 = vmand %vm728_vm2, %vm733_vm7 }
 0x4cd   :  { %v760_v21 = vsel %vm270_vm8, %v751_v10, 0.0  ;;  %vm743_vm13 = vmor %vm723_vm12, %vm738_vm6 }
 0x4ce   :  { %761 = vadd.xlane.f32.xlu1 %v760_v21  ;;  %vm748_vm1 = vmand %vm743_vm13, %vm3121_vm9 }
 0x4cf   :  { %v753_v23 = vsel %vm748_vm1, 1.0, %v2375_v0 }
 0x4d0   :  { %v766_v17 = vsel %vm270_vm8, %v753_v23, 0.0 }
 0x4d2   :  { %767 = vadd.xlane.f32.xlu1 %v766_v17 }
 0x552   :  { %v759_v34 = vpop.xlane.xlu0 %758 }
 0x553   :  { %vm2801_vm11 = vcmp.lt.f32.partialorder %v759_v34, %v795_v31 }
 0x555   :  { %v756_v37 = vpop.xlane.xlu1 %755 }
 0x556   :  { %vm2805_vm15 = vcmp.lt.f32.partialorder %v756_v37, %v794_v24 }
 0x558   :  { %v765_v45 = vpop.xlane.xlu0 %764 }
 0x559   :  { %vm2809_vm8 = vcmp.lt.f32.partialorder %v765_v45, %v797_v42 }
 0x55b   :  { %v762_v51 = vpop.xlane.xlu1 %761 }
 0x55c   :  { %vm2813_vm0 = vcmp.lt.f32.partialorder %v762_v51, %v796_v47 }
 0x55f   :  { %v768_v61 = vpop.xlane.xlu1 %767 }
 0x560   :  { %vm2817_vm10 = vcmp.lt.f32.partialorder %v768_v61, %v798_v55 }
 0x561 LB: > { %v2382_v38 = vmov 0   ;;  %v815_v12 = vstv %s2373_s4  ;;  %s873_s16 = scalar_lea.vmem [#allocation2], %s2373_s4  ;;  %s814_s4 = sadd.s32 1, %s2373_s4   ;;  %s2373_s4 = sphi %s2821_s4, %s814_s4  }
 0x562   : > { %2340 = vset.pattern.permute.xlu1 %v2382_v38  ;;  %2339 = vset.pattern.permute.xlu0 %v2382_v38  ;;  %vm817_vm4 = vcmp.eq.s32.totalorder %v2668_v6, %v815_v12  ;;  %vm816_vm2 = vcmp.eq.s32.totalorder %v2644_v1, %v815_v12  ;;  %vm818_vm7 = vcmp.eq.s32.totalorder %v2650_v2, %v815_v12  ;;  %p811_p0 = scmp.ge.s32.totalorder %s814_s4, 8  }
 0x563   : > { %vm822_vm3 = vmand %vm817_vm4, %vm2801_vm11  ;;  %vm820_vm12 = vcmp.eq.s32.totalorder %v2662_v5, %v815_v12  ;;  %vm819_vm6 = vcmp.eq.s32.totalorder %v2656_v3, %v815_v12  ;;  %2214 = vmatprep.subr.bf16.mxu0 (%p811_p0), %v2375_v0  ;;  %v2341_v45 = vld [vmem:[%s3101_s10] sm:$0xff] (%p811_p0)   ;;  %2226 = vmatprep.subr.bf16.mxu1 (%p811_p0), %v2375_v0  ;;  %v2342_v47 = vld [vmem:[%s3101_s10 + $0x8] sm:$0xff] (%p811_p0)   ;;  %vm915_vm11 = vcmask (%p811_p0), 523264   ;;  %v1026_v41 = vsub.s32 (%p811_p0), 6, %v2520_v56 }
 0x564   : > { %v827_v44 = vsel %vm822_vm3, 1, %v2382_v38  ;;  %vm821_vm5 = vmand %vm816_vm2, %vm2805_vm15  ;;  %vm3132_vm3 = vcmask 261120   ;;  %2215 = vmatpush3.bf16.msra.mxu0 (%p811_p0), %v2341_v45  ;;  %v2345_v1 = vld [vmem:[%s3099_s8] sm:$0xff] (%p811_p0)   ;;  %v2343_v2 = vld [vmem:[%s3101_s10 + $0x10] sm:$0xff] (%p811_p0)   ;;  %vm3139_vm15 = vcmask (%p811_p0), 261120   ;;  %v1461_v50 = vrot.slane (%p811_p0), %v2483_v4, %v465_v22 }
 0x565   : > { %835 = vperm.xlu1 %2340, %v827_v44   ;;  %v826_v49 = vsel %vm821_vm5, 1, %v2382_v38  ;;  %vm823_vm14 = vmand %vm818_vm7, %vm2813_vm0  ;;  %2216 = vmatprep.subr.bf16.mxu0 (%p811_p0), %v2375_v0  ;;  %v2346_v3 = vld [vmem:[%s3099_s8 + $0x8] sm:$0xff] (%p811_p0)   ;;  %v2344_v6 = vld [vmem:[%s3101_s10 + $0x18] sm:$0xff] (%p811_p0)   ;;  %v1027_v46 = vrot.slane (%p811_p0), %v2528_v58, %v1026_v41  ;;  %v1161_v51 = vsub.s32 (%p811_p0), 7, %v2520_v56  ;;  %v1021_v55 = vsub.s32 (%p811_p0), 5, %v2520_v56 }
 0x566   : > { %832 = vperm.xlu0 %2339, %v826_v49   ;;  %v828_v14 = vsel %vm823_vm14, 1, %v2382_v38  ;;  %vm825_vm13 = vmand %vm820_vm12, %vm2817_vm10  ;;  %2227 = vmatpush3.bf16.msra.mxu1 (%p811_p0), %v2345_v1  ;;  %v2350_v36 = vld [vmem:[%s3100_s9 + $0x18] sm:$0xff] (%p811_p0)   ;;  %v889_v61 = vsub.s32 (%p811_p0), 4, %v2520_v56 }
 0x567   : > { %v830_v43 = vsel %vm825_vm13, 1, %v2382_v38  ;;  %vm824_vm9 = vmand %vm819_vm6, %vm2809_vm8  ;;  %2228 = vmatprep.subr.bf16.mxu1 (%p811_p0), %v2375_v0  ;;  %v1162_v53 = vrot.slane (%p811_p0), %v2528_v58, %v1161_v51  ;;  %v1022_v9 = vrot.slane (%p811_p0), %v2528_v58, %v1021_v55 }
 0x568   : > { %v829_v15 = vsel %vm824_vm9, 1, %v2382_v38  ;;  %vm3133_vm12 = vmmov %vm3132_vm3  ;;  %2217 = vmatpush3.bf16.msra.mxu0 (%p811_p0), %v2342_v47  ;;  %v890_v22 = vrot.slane (%p811_p0), %v2528_v58, %v889_v61 }
 0x569   : > { %838 = vperm.xlu1 %2340, %v828_v14   ;;  %vm3134_vm14 = vmmov %vm3132_vm3  ;;  %2218 = vmatprep.subr.bf16.mxu0 (%p811_p0), %v2375_v0 }
 0x56a   : > { %844 = vperm.xlu0 %2339, %v830_v43   ;;  %vm3135_vm6 = vmmov %vm3132_vm3  ;;  %2229 = vmatpush3.bf16.msra.mxu1 (%p811_p0), %v2346_v3 }
 0x56b   : > { %vm3136_vm13 = vmmov %vm3132_vm3  ;;  %2239 = vmatprep.subr.bf16.mxu1 (%p811_p0), %v2375_v0 }
 0x56c   :  { %2219 = vmatpush3.bf16.msra.mxu0 (%p811_p0), %v2343_v2 }
 0x56d   :  { %2220 = vmatprep.subr.bf16.mxu0 (%p811_p0), %v2375_v0 }
 0x56e   : > { %841 = vperm.xlu0 %2339, %v829_v15  }
 0x570   :  { %2221 = vmatpush3.bf16.msra.mxu0 (%p811_p0), %v2344_v6 }
 0x571   :  { %2234 = vmatprep.subr.mxu0 (%p811_p0), %v2375_v0 }
 0x572   :  { %1029 = vrot.lane.b32.xlu0 (%p811_p0), %v1027_v46, %s2378_s21 }
 0x576   :  { %1463 = vrot.lane.b32.xlu0 (%p811_p0), %v1461_v50, %s2378_s21 }
 0x57a   :  { %1164 = vrot.lane.b32.xlu0 (%p811_p0), %v1162_v53, %s2378_s21 }
 0x5e4   : > { %v836_v54 = vpop.permute.xlu1 %835 }
 0x5e5   : > { %v833_v16 = vpop.permute.xlu0 %832  ;;  %vm847_vm4 = vcmp.eq.s32.totalorder %v836_v54, 1 }
 0x5e6   : > { %vm846_vm1 = vcmp.eq.s32.totalorder %v833_v16, 1  ;;  %v852_v10 = vsel %vm847_vm4, %v2737_v52, -1e+30  ;;  %vm3138_vm4 = vmmov (%p811_p0), 0   ;;  %v2347_v52 = vld [vmem:[%s3100_s9] sm:$0xff] (%p811_p0)  }
 0x5e7   : > { %v851_v8 = vsel %vm846_vm1, %v2730_v48, -1e+30  ;;  %v857_v27 = vsel %vm3134_vm14, %v852_v10, -inf  ;;  %vm3137_vm1 = vcmask 253952   ;;  %2222 = vmatprep.mubr.msk.bf16.mxu0 (%p811_p0), %vm3138_vm4, %v2375_v0  ;;  %2230 = vmatprep.mubr.msk.bf16.mxu1 (%p811_p0), %vm3138_vm4, %v2375_v0 }
 0x5e8   : > { %v839_v7 = vpop.permute.xlu1 %838  ;;  %v856_v11 = vsel %vm3132_vm3, %v851_v8, -inf }
 0x5e9   : > { %v845_v18 = vpop.permute.xlu0 %844  ;;  %vm848_vm2 = vcmp.eq.s32.totalorder %v839_v7, 1 }
 0x5ea   : > { %vm850_vm7 = vcmp.eq.s32.totalorder %v845_v18, 1  ;;  %v853_v21 = vsel %vm848_vm2, %v2741_v60, -1e+30  ;;  %v878_v60 = vld [vmem:[%s3097_s5] sm:$0xf] (%p811_p0) }
 0x5eb   : > { %v855_v19 = vsel %vm850_vm7, %v2747_v39, -1e+30  ;;  %v858_v28 = vsel %vm3135_vm6, %v853_v21, -inf  ;;  %2223 = vmatmul.mubr.msk.bf16.vlgmr.msra.gmra.mrb[16].mxu0 (%p811_p0), %vm915_vm11, %v878_v60  ;;  %v2349_v39 = vld [vmem:[%s3100_s9 + $0x10] sm:$0xff] (%p811_p0)   ;;  %v2383_v18 = vmov (%p811_p0), 1966171168  }
 0x5ec   : > { %v860_v20 = vsel %vm3133_vm12, %v855_v19, -inf  ;;  %2236 = vmatprep.mubr.msk.f32.mxu0 (%p811_p0), %vm3138_vm4, %v2375_v0  ;;  %v1036_v58 = vunpack.c.l.s4 (%p811_p0), %v2383_v18 }
 0x5ed   : > { %v861_v23 = vmax.f32 %v856_v11, %v860_v20  ;;  %v842_v17 = vpop.permute.xlu0 %841 }
 0x5ee   : > { %vm849_vm5 = vcmp.eq.s32.totalorder %v842_v17, 1  ;;  %v1037_v19 = vunpack.c.0.s8 (%p811_p0), %v1036_v58 }
 0x5ef   : > { %v854_v25 = vsel %vm849_vm5, %v2744_v63, -1e+30  ;;  %v862_v30 = vmax.f32 %v861_v23, %v857_v27  ;;  %v2348_v63 = vld [vmem:[%s3100_s9 + $0x8] sm:$0xff] (%p811_p0)  }
 0x5f0   : > { %v859_v29 = vsel %vm3136_vm13, %v854_v25, -inf  ;;  %v2935_v20 = vsub.s32 (%p811_p0), %v1037_v19, %v2520_v56 }
 0x5f1   : > { %v863_v31 = vmax.f32 %v858_v28, %v859_v29  ;;  %v1030_v11 = vpop.permute.xlu0 (%p811_p0), %1029 }
 0x5f3   : > { %v864_v32 = vmax.f32 %v862_v30, %v863_v31 }
 0x5f5   : > { %v865_v33 = vrot.slane %v864_v32, 4 }
 0x5f7   : > { %v866_v34 = vmax.f32 %v864_v32, %v865_v33 }
 0x5f9   : > { %v867_v35 = vrot.slane %v866_v34, 2 }
 0x5fb   : > { %v868_v24 = vmax.f32 %v866_v34, %v867_v35  ;;  %v2945_v35 = vpop.permute.xlu0 (%p811_p0), %1463 }
 0x5fd   : > { %v869_v37 = vrot.slane %v868_v24, 1  ;;  %813 = sbr.rel (!%p811_p0) target bundleno = 1377 (0x561), region = 92 }
 0x5ff   : > { %v870_v40 = vmax.f32 %v868_v24, %v869_v37  ;;  %v1165_v1 = vpop.permute.xlu0 (%p811_p0), %1164 }
 0x601   : > { %vm871_vm9 = vcmp.gt.f32.partialorder %v870_v40, -5e+29 }
 0x602   : > { %v872_v42 = vsel %vm871_vm9, %v870_v40, 0.0 }
 0x603   : > { %874 = vst.msk [vmem:[%s873_s16] sm:$0x1] %vm3137_vm1, %v872_v42 }
 0x60a   :  { %v875_v5 = vld [vmem:[#allocation2] sm:$0xff] }
 0x60b   :  { %v959_v48 = vpack.c.bf16 %v875_v5, %v875_v5 }
 0x60d   :  { %2231 = vmatmul.mubr.msk.bf16.vlgmr.msra.gmra.mrb[24].mxu1 %vm3139_vm15, %v959_v48 }
 0x60e   :  { %2240 = vmatpush3.bf16.msra.mxu1 %v2347_v52  ;;  %2247 = vmatprep.mubr.msk.bf16.mxu1 %vm3138_vm4, %v2375_v0 }
 0x60f   :  { %2241 = vmatprep.subr.bf16.mxu1 %v2375_v0 }
 0x612   :  { %2242 = vmatpush3.bf16.msra.mxu1 %v2348_v63 }
 0x613   :  { %2243 = vmatprep.subr.bf16.mxu1 %v2375_v0 }
 0x616   :  { %2244 = vmatpush3.bf16.msra.mxu1 %v2349_v39 }
 0x617   :  { %2245 = vmatprep.subr.bf16.mxu1 %v2375_v0 }
 0x61a   :  { %2246 = vmatpush3.bf16.msra.mxu1 %v2350_v36 }
 0x6be   :  { %v953_v14 = vpop.f32.mrb[16].mxu0 }
 0x6bf   :  { %v954_v15 = vadd.f32 %v953_v14, %v890_v22  ;;  %v2224_v54 = vpop.f32.mrb[17].mxu0 }
 0x6c0   :  { %v956_v16 = vpop.f32.mrb[18].mxu0 }
 0x6c1   :  { %v1377_v7 = vpack.c.bf16 %v954_v15, %v954_v15  ;;  %v2225_v8 = vpop.f32.mrb[19].mxu0  ;;  %v1456_v15 = vrot.slane %v2483_v4, %v119_v59  ;;  %v1596_v59 = vrot.slane %v2483_v4, %v539_v26 }
 0x6c3   :  { %2248 = vmatmul.mubr.msk.bf16.vlgmr.msra.gmra.mrb[28].mxu1 %vm915_vm11, %v1377_v7 }
 0x6e0   :  { %v1013_v38 = vpop.f32.mrb[24].mxu1 }
 0x6e1   :  { %v1023_v12 = vadd.f32 %v1022_v9, %v1013_v38  ;;  %v2232_v44 = vpop.f32.mrb[25].mxu1  ;;  %v1032_v10 = vadd.f32 %v1030_v11, %v1013_v38 }
 0x6e2   :  { %v1016_v49 = vpop.f32.mrb[26].mxu1 }
 0x6e3   :  { %1124 = vrot.lane.b32.xlu1 %v1023_v12, %s2378_s21  ;;  %v2233_v43 = vpop.f32.mrb[27].mxu1  ;;  %2235 = vmatpush3.msra.mxu0 %v1023_v12  ;;  %v1034_v21 = vcombine.high %v1032_v10, %v1032_v10  ;;  %v1041_v23 = vrot.slane %v1032_v10, %v2935_v20 }
 0x6e4   :  { %2251 = vmatprep.subr.mxu0 %v2375_v0 }
 0x6e5   :  { %v1048_v17 = vrot.slane %v1034_v21, %v2935_v20  ;;  %v1057_v25 = vrot.slane %v1041_v23, %v2935_v20  ;;  %v1049_v44 = vcombine.high %v1041_v23, %v1041_v23 }
 0x6e7   :  { %v1050_v27 = vcombine.high %v1048_v17, %v1048_v17  ;;  %v1064_v28 = vrot.slane %v1048_v17, %v2935_v20  ;;  %v1079_v29 = vcombine.high %v1057_v25, %v1057_v25  ;;  %v1086_v32 = vrot.slane %v1057_v25, %v2523_v57 }
 0x6e8   :  { %v1071_v49 = vrot.slane %v1049_v44, %v2935_v20 }
 0x6e9   :  { %v1078_v30 = vrot.slane %v1050_v27, %v2935_v20  ;;  %v1080_v31 = vcombine.high %v1064_v28, %v1064_v28  ;;  %v1094_v33 = vrot.slane %v1079_v29, %v2523_v57  ;;  %v1102_v34 = vrot.slane %v1064_v28, %v2523_v57 }
 0x6ea   :  { %v1081_v14 = vcombine.high %v1071_v49, %v1071_v49  ;;  %v1090_v43 = vrot.slane %v1071_v49, %v2523_v57 }
 0x6eb   :  { %v1082_v37 = vcombine.high %v1078_v30, %v1078_v30  ;;  %v1110_v47 = vrot.slane %v1080_v31, %v2523_v57  ;;  %v1106_v10 = vrot.slane %v1078_v30, %v2523_v57 }
 0x6ec   :  { %v1098_v16 = vrot.slane %v1081_v14, %v2523_v57 }
 0x6ed   :  { %v1114_v5 = vrot.slane %v1082_v37, %v2523_v57 }
 0x755   :  { %v1125_v24 = vpop.permute.xlu1 %1124 }
 0x756   :  { %v1127_v40 = vadd.f32 %v1125_v24, %v1086_v32  ;;  %v1129_v42 = vadd.f32 %v1125_v24, %v1094_v33  ;;  %v1131_v45 = vadd.f32 %v1125_v24, %v1102_v34  ;;  %v1133_v60 = vadd.f32 %v1125_v24, %v1110_v47 }
 0x757   :  { %v1134_v50 = vadd.f32 %v1125_v24, %v1114_v5  ;;  %v1128_v54 = vadd.f32 %v1125_v24, %v1090_v43  ;;  %v1130_v11 = vadd.f32 %v1125_v24, %v1098_v16  ;;  %v1132_v25 = vadd.f32 %v1125_v24, %v1106_v10 }
 0x758   :  { %vm1135_vm8 = vcmp.gt.f32.partialorder %v1127_v40, 0.0  ;;  %v1143_v2 = vmul.f32 0.2, %v1127_v40  ;;  %vm1137_vm0 = vcmp.gt.f32.partialorder %v1129_v42, 0.0  ;;  %v1145_v3 = vmul.f32 0.2, %v1129_v42 }
 0x759   :  { %v1147_v52 = vmul.f32 0.2, %v1131_v45  ;;  %vm1139_vm10 = vcmp.gt.f32.partialorder %v1131_v45, 0.0  ;;  %v1149_v46 = vmul.f32 0.2, %v1133_v60  ;;  %vm1141_vm2 = vcmp.gt.f32.partialorder %v1133_v60, 0.0 }
 0x75a   :  { %v1151_v6 = vsel %vm1135_vm8, %v1127_v40, %v1143_v2  ;;  %v1153_v48 = vsel %vm1137_vm0, %v1129_v42, %v1145_v3  ;;  %v1150_v9 = vmul.f32 0.2, %v1134_v50  ;;  %vm1142_vm7 = vcmp.gt.f32.partialorder %v1134_v50, 0.0 }
 0x75b   :  { %v1167_v63 = vmul.f32 %v1165_v1, %v1151_v6  ;;  %v1169_v39 = vmul.f32 %v1165_v1, %v1153_v48  ;;  %v1155_v36 = vsel %vm1139_vm10, %v1131_v45, %v1147_v52  ;;  %v1157_v53 = vsel %vm1141_vm2, %v1133_v60, %v1149_v46 }
 0x75c   :  { %v1171_v51 = vmul.f32 %v1165_v1, %v1155_v36  ;;  %v1173_v22 = vmul.f32 %v1165_v1, %v1157_v53  ;;  %v1158_v38 = vsel %vm1142_vm7, %v1134_v50, %v1150_v9  ;;  %v1144_v19 = vmul.f32 0.2, %v1128_v54 }
 0x75d   :  { %1183 = vrot.lane.b32.xlu0 %v1167_v63, %s2377_s13  ;;  %v1174_v12 = vmul.f32 %v1165_v1, %v1158_v38  ;;  %vm1136_vm3 = vcmp.gt.f32.partialorder %v1128_v54, 0.0  ;;  %v1146_v17 = vmul.f32 0.2, %v1130_v11  ;;  %vm1138_vm12 = vcmp.gt.f32.partialorder %v1130_v11, 0.0 }
 0x75e   :  { %v1152_v23 = vsel %vm1136_vm3, %v1128_v54, %v1144_v19  ;;  %v1148_v29 = vmul.f32 0.2, %v1132_v25  ;;  %vm1140_vm5 = vcmp.gt.f32.partialorder %v1132_v25, 0.0  ;;  %vm3140_vm0 = vcmask 130048  }
 0x75f   :  { %v1168_v27 = vmul.f32 %v1165_v1, %v1152_v23  ;;  %v1154_v28 = vsel %vm1138_vm12, %v1130_v11, %v1146_v17  ;;  %vm3141_vm10 = vmmov %vm3140_vm0 }
 0x760   :  { %v1170_v30 = vmul.f32 %v1165_v1, %v1154_v28  ;;  %v1156_v31 = vsel %vm1140_vm5, %v1132_v25, %v1148_v29  ;;  %vm3142_vm2 = vmmov %vm3140_vm0 }
 0x761   :  { %1187 = vrot.lane.b32.xlu0 %v1169_v39, %s2377_s13  ;;  %v1172_v32 = vmul.f32 %v1165_v1, %v1156_v31  ;;  %vm3143_vm7 = vmmov %vm3140_vm0 }
 0x762   :  { %vm3144_vm3 = vmmov %vm3140_vm0 }
 0x763   :  { %vm3145_vm12 = vmmov %vm3140_vm0 }
 0x764   :  { %vm3146_vm5 = vmmov %vm3140_vm0 }
 0x765   :  { %1191 = vrot.lane.b32.xlu0 %v1171_v51, %s2377_s13 }
 0x769   :  { %1195 = vrot.lane.b32.xlu0 %v1173_v22, %s2377_s13 }
 0x76d   :  { %1197 = vrot.lane.b32.xlu0 %v1174_v12, %s2377_s13 }
 0x796   :  { %v1447_v7 = vpop.f32.mrb[28].mxu1 }
 0x797   :  { %v2249_v8 = vpop.f32.mrb[29].mxu1  ;;  %v2960_v18 = vadd.f32 %v1456_v15, %v1447_v7  ;;  %v1466_v26 = vadd.f32 %v2945_v35, %v1447_v7 }
 0x798   :  { %v1450_v58 = vpop.f32.mrb[30].mxu1 }
 0x799   :  { %1558 = vrot.lane.b32.xlu1 %v2960_v18, %s2378_s21  ;;  %v2250_v21 = vpop.f32.mrb[31].mxu1  ;;  %v1468_v33 = vcombine.high %v1466_v26, %v1466_v26  ;;  %v1475_v34 = vrot.slane %v1466_v26, %v2935_v20 }
 0x79b   :  { %v1482_v24 = vrot.slane %v1468_v33, %v2935_v20  ;;  %v1483_v37 = vcombine.high %v1475_v34, %v1475_v34  ;;  %v1491_v40 = vrot.slane %v1475_v34, %v2935_v20 }
 0x79d   :  { %1598 = vrot.lane.b32.xlu1 %v1596_v59, %s2378_s21  ;;  %v1498_v42 = vrot.slane %v1482_v24, %v2935_v20  ;;  %v1505_v45 = vrot.slane %v1483_v37, %v2935_v20  ;;  %v1513_v47 = vcombine.high %v1491_v40, %v1491_v40  ;;  %v1484_v2 = vcombine.high %v1482_v24, %v1482_v24 }
 0x79e   :  { %v1520_v5 = vrot.slane %v1491_v40, %v2523_v57 }
 0x79f   :  { %v1515_v3 = vcombine.high %v1505_v45, %v1505_v45  ;;  %v1514_v1 = vcombine.high %v1498_v42, %v1498_v42  ;;  %v1528_v35 = vrot.slane %v1513_v47, %v2523_v57  ;;  %v1524_v6 = vrot.slane %v1505_v45, %v2523_v57 }
 0x7a0   :  { %v1536_v48 = vrot.slane %v1498_v42, %v2523_v57  ;;  %v1512_v52 = vrot.slane %v1484_v2, %v2935_v20 }
 0x7a1   :  { %1185 = vrot.lane.b32.xlu1 %v1168_v27, %s2377_s13  ;;  %v1532_v63 = vrot.slane %v1515_v3, %v2523_v57  ;;  %v1544_v39 = vrot.slane %v1514_v1, %v2523_v57 }
 0x7a2   :  { %v1540_v43 = vrot.slane %v1512_v52, %v2523_v57  ;;  %v1516_v15 = vcombine.high %v1512_v52, %v1512_v52 }
 0x7a4   :  { %v1548_v10 = vrot.slane %v1516_v15, %v2523_v57 }
 0x7a5   :  { %1189 = vrot.lane.b32.xlu1 %v1170_v30, %s2377_s13 }
 0x7a9   :  { %1193 = vrot.lane.b32.xlu1 %v1172_v32, %s2377_s13 }
 0x7cf   :  { %v1184_v34 = vpop.permute.xlu0 %1183 }
 0x7d0   :  { %v1207_v37 = vsel %vm3140_vm0, %v1184_v34, 0.0 }
 0x7d3   :  { %v1188_v40 = vpop.permute.xlu0 %1187 }
 0x7d4   :  { %v1213_v45 = vsel %vm3141_vm10, %v1188_v40, 0.0  ;;  %vm1271_vm10 = vcmask 1041409  }
 0x7d7   :  { %v1192_v3 = vpop.permute.xlu0 %1191 }
 0x80b   :  { %v1559_v60 = vpop.permute.xlu1 %1558 }
 0x80c   :  { %v1562_v36 = vadd.f32 %v1559_v60, %v1524_v6  ;;  %v1561_v46 = vadd.f32 %v1559_v60, %v1520_v5  ;;  %v1563_v50 = vadd.f32 %v1559_v60, %v1528_v35  ;;  %v1565_v51 = vadd.f32 %v1559_v60, %v1536_v48  ;;  %v1196_v35 = vpop.permute.xlu0 %1195 }
 0x80d   :  { %v1564_v53 = vadd.f32 %v1559_v60, %v1532_v63  ;;  %v1567_v9 = vadd.f32 %v1559_v60, %v1544_v39  ;;  %v1566_v19 = vadd.f32 %v1559_v60, %v1540_v43  ;;  %v1568_v27 = vadd.f32 %v1559_v60, %v1548_v10 }
 0x80e   :  { %vm1570_vm14 = vcmp.gt.f32.partialorder %v1562_v36, 0.0  ;;  %v1578_v22 = vmul.f32 0.2, %v1562_v36  ;;  %vm1569_vm6 = vcmp.gt.f32.partialorder %v1561_v46, 0.0  ;;  %v1577_v38 = vmul.f32 0.2, %v1561_v46 }
 0x80f   :  { %v1599_v12 = vpop.permute.xlu1 %1598  ;;  %vm1571_vm13 = vcmp.gt.f32.partialorder %v1563_v50, 0.0  ;;  %v1579_v44 = vmul.f32 0.2, %v1563_v50  ;;  %vm1573_vm9 = vcmp.gt.f32.partialorder %v1565_v51, 0.0  ;;  %v1581_v20 = vmul.f32 0.2, %v1565_v51 }
 0x810   :  { %v1586_v49 = vsel %vm1570_vm14, %v1562_v36, %v1578_v22  ;;  %v1585_v14 = vsel %vm1569_vm6, %v1561_v46, %v1577_v38  ;;  %v1580_v58 = vmul.f32 0.2, %v1564_v53  ;;  %vm1572_vm1 = vcmp.gt.f32.partialorder %v1564_v53, 0.0  ;;  %v1198_v52 = vpop.permute.xlu0 %1197  ;;  %vm3147_vm14 = vmmov %vm3140_vm0 }
 0x811   :  { %v1602_v54 = vmul.f32 %v1599_v12, %v1586_v49  ;;  %v1601_v16 = vmul.f32 %v1599_v12, %v1585_v14  ;;  %v1587_v7 = vsel %vm1571_vm13, %v1563_v50, %v1579_v44  ;;  %v1589_v8 = vsel %vm1573_vm9, %v1565_v51, %v1581_v20  ;;  %vm3148_vm6 = vmmov %vm3140_vm0 }
 0x812   :  { %vm1575_vm11 = vcmp.gt.f32.partialorder %v1567_v9, 0.0  ;;  %v1583_v11 = vmul.f32 0.2, %v1567_v9  ;;  %v1603_v21 = vmul.f32 %v1599_v12, %v1587_v7  ;;  %v1605_v59 = vmul.f32 %v1599_v12, %v1589_v8  ;;  %vm3149_vm13 = vmmov %vm3140_vm0 }
 0x813   :  { %1619 = vrot.lane.b32.xlu1 %v1602_v54, %s2377_s13  ;;  %1617 = vrot.lane.b32.xlu0 %v1601_v16, %s2377_s13  ;;  %v1588_v23 = vsel %vm1572_vm1, %v1564_v53, %v1580_v58  ;;  %v1582_v25 = vmul.f32 0.2, %v1566_v19  ;;  %vm1574_vm15 = vcmp.gt.f32.partialorder %v1566_v19, 0.0  ;;  %v1584_v31 = vmul.f32 0.2, %v1568_v27  ;;  %v1186_v24 = vpop.permute.xlu1 %1185  ;;  %vm3150_vm9 = vmmov %vm3140_vm0 }
 0x814   :  { %v1591_v17 = vsel %vm1575_vm11, %v1567_v9, %v1583_v11  ;;  %v1604_v28 = vmul.f32 %v1599_v12, %v1588_v23  ;;  %vm1576_vm8 = vcmp.gt.f32.partialorder %v1568_v27, 0.0  ;;  %v1210_v5 = vsel %vm3144_vm3, %v1186_v24, 0.0  ;;  %vm3151_vm1 = vmmov %vm3140_vm0 }
 0x815   :  { %v1607_v29 = vmul.f32 %v1599_v12, %v1591_v17  ;;  %v1590_v30 = vsel %vm1574_vm15, %v1566_v19, %v1582_v25  ;;  %v1592_v26 = vsel %vm1576_vm8, %v1568_v27, %v1584_v31  ;;  %v1219_v6 = vsel %vm3145_vm12, %v1192_v3, 0.0  ;;  %vm3152_vm11 = vmmov %vm3140_vm0 }
 0x816   :  { %v1606_v32 = vmul.f32 %v1599_v12, %v1590_v30  ;;  %v1608_v33 = vmul.f32 %v1599_v12, %v1592_v26  ;;  %v1225_v48 = vsel %vm3146_vm5, %v1196_v35, 0.0  ;;  %v1228_v60 = vsel %vm3147_vm14, %v1198_v52, 0.0  ;;  %vm3153_vm15 = vmmov %vm3140_vm0  ;;  %v876_v30 = vld [vmem:[%s3098_s6] sm:$0xff] }
 0x817   :  { %1621 = vrot.lane.b32.xlu1 %v1603_v21, %s2377_s13  ;;  %1625 = vrot.lane.b32.xlu0 %v1605_v59, %s2377_s13  ;;  %v1190_v42 = vpop.permute.xlu1 %1189  ;;  %vm3154_vm8 = vmmov %vm3140_vm0  ;;  %v1241_v16 = vsub.s32 %v2756_v13, %v2520_v56  ;;  %vm1277_vm3 = vcmask 1044484   ;;  %vm1279_vm12 = vcmask 1045509   ;;  %vm1281_vm5 = vcmask 1046534  }
 0x818   :  { %v1216_v47 = vsel %vm3142_vm2, %v1190_v42, 0.0  ;;  %vm1273_vm2 = vcmask 1042434   ;;  %vm1283_vm14 = vcmask 1047559  }
 0x81b   :  { %1623 = vrot.lane.b32.xlu1 %v1604_v28, %s2377_s13  ;;  %1629 = vrot.lane.b32.xlu0 %v1607_v29, %s2377_s13  ;;  %v1194_v2 = vpop.permute.xlu1 %1193 }
 0x81c   :  { %v1222_v1 = vsel %vm3143_vm7, %v1194_v2, 0.0  ;;  %vm1275_vm7 = vcmask 1043459  }
 0x81f   :  { %1627 = vrot.lane.b32.xlu1 %v1606_v32, %s2377_s13 }
 0x823   :  { %1631 = vrot.lane.b32.xlu1 %v1608_v33, %s2377_s13 }
 0x83a   :  { %1208 = vadd.xlane.f32.xlu0 %v1207_v37 }
 0x83e   :  { %1214 = vadd.xlane.f32.xlu0 %v1213_v45 }
 0x842   :  { %1217 = vadd.xlane.f32.xlu0 %v1216_v47 }
 0x846   :  { %1223 = vadd.xlane.f32.xlu0 %v1222_v1 }
 0x847   :  { %1211 = vadd.xlane.f32.xlu1 %v1210_v5 }
 0x84b   :  { %1220 = vadd.xlane.f32.xlu1 %v1219_v6 }
 0x84f   :  { %1226 = vadd.xlane.f32.xlu1 %v1225_v48 }
 0x853   :  { %1229 = vadd.xlane.f32.xlu1 %v1228_v60 }
 0x885   :  { %v1618_v63 = vpop.permute.xlu0 %1617  ;;  %v1620_v39 = vpop.permute.xlu1 %1619 }
 0x886   :  { %v1641_v36 = vsel %vm3148_vm6, %v1618_v63, 0.0  ;;  %v1644_v46 = vsel %vm3149_vm13, %v1620_v39, 0.0  ;;  %vm877_vm6 = vcmp.gt.f32.partialorder %v876_v30, 0.5  ;;  %vm1287_vm13 = vcmask 64512   ;;  %v1860_v30 = vld [vmem:[%s3102_s11 + $0x18] sm:$0xff] }
 0x887   :  { %1642 = vadd.xlane.f32.xlu1 %v1641_v36  ;;  %1645 = vadd.xlane.f32.xlu0 %v1644_v46 }
 0x889   :  { %v1626_v50 = vpop.permute.xlu0 %1625  ;;  %v1622_v51 = vpop.permute.xlu1 %1621 }
 0x88a   :  { %v1653_v53 = vsel %vm3150_vm9, %v1626_v50, 0.0  ;;  %v1647_v9 = vsel %vm3151_vm1, %v1622_v51, 0.0  ;;  %vm3155_vm9 = vmmov %vm3140_vm0 }
 0x88b   :  { %1654 = vadd.xlane.f32.xlu1 %v1653_v53  ;;  %1648 = vadd.xlane.f32.xlu0 %v1647_v9  ;;  %vm3156_vm1 = vmmov %vm3140_vm0 }
 0x88d   :  { %v1630_v22 = vpop.permute.xlu0 %1629  ;;  %v1624_v38 = vpop.permute.xlu1 %1623 }
 0x88e   :  { %v1659_v12 = vsel %vm3152_vm11, %v1630_v22, 0.0  ;;  %v1650_v44 = vsel %vm3153_vm15, %v1624_v38, 0.0  ;;  %vm3157_vm15 = vmmov %vm3140_vm0 }
 0x88f   :  { %1660 = vadd.xlane.f32.xlu1 %v1659_v12  ;;  %1651 = vadd.xlane.f32.xlu0 %v1650_v44 }
 0x891   :  { %v1628_v20 = vpop.permute.xlu1 %1627 }
 0x892   :  { %v1656_v49 = vsel %vm3154_vm8, %v1628_v20, 0.0  ;;  %vm3158_vm8 = vmmov %vm3140_vm0 }
 0x893   :  { %1657 = vadd.xlane.f32.xlu0 %v1656_v49 }
 0x895   :  { %v1632_v14 = vpop.permute.xlu1 %1631 }
 0x896   :  { %v1662_v43 = vsel %vm3140_vm0, %v1632_v14, 0.0 }
 0x897   :  { %1663 = vadd.xlane.f32.xlu0 %v1662_v43 }
 0x8c7   :  { %v1209_v15 = vpop.xlane.xlu0 %1208 }
 0x8c8   :  { %v1242_v8 = vrot.slane %v1209_v15, %v1241_v16 }
 0x8cb   :  { %v1215_v54 = vpop.xlane.xlu0 %1214 }
 0x8cc   :  { %v1250_v19 = vrot.slane %v1215_v54, %v1241_v16 }
 0x8cf   :  { %v1218_v11 = vpop.xlane.xlu0 %1217 }
 0x8d0   :  { %v1254_v23 = vrot.slane %v1218_v11, %v1241_v16 }
 0x8d3   :  { %v1224_v27 = vpop.xlane.xlu0 %1223 }
 0x8d4   :  { %v1212_v7 = vpop.xlane.xlu1 %1211  ;;  %v1262_v31 = vrot.slane %v1224_v27, %v1241_v16 }
 0x8d5   :  { %v1246_v58 = vrot.slane %v1212_v7, %v1241_v16 }
 0x8d7   :  { %v1272_v10 = vsel %vm1271_vm10, %v1246_v58, %v1242_v8 }
 0x8d8   :  { %v1274_v21 = vsel %vm1273_vm2, %v1250_v19, %v1272_v10  ;;  %v1221_v59 = vpop.xlane.xlu1 %1220 }
 0x8d9   :  { %v1258_v17 = vrot.slane %v1221_v59, %v1241_v16  ;;  %v1276_v25 = vsel %vm1275_vm7, %v1254_v23, %v1274_v21 }
 0x8db   :  { %v1278_v28 = vsel %vm1277_vm3, %v1258_v17, %v1276_v25 }
 0x8dc   :  { %v1227_v13 = vpop.xlane.xlu1 %1226  ;;  %v1280_v33 = vsel %vm1279_vm12, %v1262_v31, %v1278_v28  ;;  %v1859_v28 = vld [vmem:[%s3102_s11 + $0x10] sm:$0xff] }
 0x8dd   :  { %v1266_v29 = vrot.slane %v1227_v13, %v1241_v16  ;;  %v1857_v13 = vld [vmem:[%s3102_s11] sm:$0xff]  ;;  %v2286_v31 = vpack.c.bf16 %v1860_v30, %v1859_v28  ;;  %v1942_v30 = vld [vmem:[%s3103_s12 + $0x8] sm:$0xff] }
 0x8df   :  { %v1282_v34 = vsel %vm1281_vm5, %v1266_v29, %v1280_v33  ;;  %v1729_v33 = vrot.slane %v2483_v4, %v889_v61 }
 0x8e0   :  { %v1230_v32 = vpop.xlane.xlu1 %1229 }
 0x8e1   :  { %v1270_v26 = vrot.slane %v1230_v32, %v1241_v16 }
 0x8e3   :  { %v1284_v24 = vsel %vm1283_vm14, %v1270_v26, %v1282_v34 }
 0x8e4   :  { %v1286_v37 = vsel %vm877_vm6, %v1284_v24, -1e+30 }
 0x8e5   :  { %v1288_v40 = vsel %vm1287_vm13, %v1286_v37, -inf }
 0x8e6   :  { %1289 = vmax.xlane.f32.xlu1 %v1288_v40 }
 0x914   :  { %v1646_v42 = vpop.xlane.xlu0 %1645  ;;  %v1643_v45 = vpop.xlane.xlu1 %1642 }
 0x915   :  { %v1680_v2 = vrot.slane %v1646_v42, %v1241_v16  ;;  %v1676_v3 = vrot.slane %v1643_v45, %v1241_v16 }
 0x917   :  { %v1705_v6 = vsel %vm1271_vm10, %v1680_v2, %v1676_v3  ;;  %vm3159_vm10 = vmmov %vm3156_vm1 }
 0x918   :  { %v1649_v47 = vpop.xlane.xlu0 %1648  ;;  %v1655_v5 = vpop.xlane.xlu1 %1654 }
 0x919   :  { %v1684_v1 = vrot.slane %v1649_v47, %v1241_v16  ;;  %v1692_v63 = vrot.slane %v1655_v5, %v1241_v16 }
 0x91b   :  { %v1706_v52 = vsel %vm1273_vm2, %v1684_v1, %v1705_v6  ;;  %vm3160_vm2 = vcmask 261120  }
 0x91c   :  { %v1652_v35 = vpop.xlane.xlu0 %1651  ;;  %v1661_v36 = vpop.xlane.xlu1 %1660 }
 0x91d   :  { %v1688_v48 = vrot.slane %v1652_v35, %v1241_v16  ;;  %v1700_v53 = vrot.slane %v1661_v36, %v1241_v16 }
 0x91f   :  { %v1707_v60 = vsel %vm1275_vm7, %v1688_v48, %v1706_v52 }
 0x920   :  { %v1658_v39 = vpop.xlane.xlu0 %1657  ;;  %v1708_v50 = vsel %vm1277_vm3, %v1692_v63, %v1707_v60  ;;  %vm2020_vm3 = vcmask 15360  }
 0x921   :  { %v1696_v46 = vrot.slane %v1658_v39, %v1241_v16 }
 0x923   :  { %v1709_v51 = vsel %vm1279_vm12, %v1696_v46, %v1708_v50 }
 0x924   :  { %v1664_v9 = vpop.xlane.xlu0 %1663  ;;  %v1710_v38 = vsel %vm1281_vm5, %v1700_v53, %v1709_v51 }
 0x925   :  { %v1704_v22 = vrot.slane %v1664_v9, %v1241_v16 }
 0x927   :  { %v1711_v12 = vsel %vm1283_vm14, %v1704_v22, %v1710_v38  ;;  %v1303_v22 = vrot.slane %v2483_v4, %v2523_v57 }
 0x928   :  { %v1713_v44 = vsel %vm877_vm6, %v1711_v12, -1e+30 }
 0x929   :  { %v1714_v20 = vsel %vm1287_vm13, %v1713_v44, -inf }
 0x92a   :  { %1715 = vmax.xlane.f32.xlu0 %v1714_v20 }
 0x973   :  { %v1290_v49 = vpop.xlane.xlu1 %1289 }
 0x974   :  { %v1291_v14 = vsub.f32 %v1286_v37, %v1290_v49 }
 0x976   :  { %v1292_v43 = vmul.f32 1.442695, %v1291_v14 }
 0x978   :  { %2351 = vpow2.f32 %v1292_v43 }
 0x982   :  { %v2352_v15 = vpop.eup %2351 }
 0x983   :  { %v1294_v54 = vsel %vm877_vm6, %v2352_v15, 0.0 }
 0x984   :  { %v1295_v7 = vsel %vm1287_vm13, %v1294_v54, 0.0 }
 0x985   :  { %1296 = vadd.xlane.f32.xlu1 %v1295_v7 }
 0x9b7   :  { %v1716_v16 = vpop.xlane.xlu0 %1715 }
 0x9b8   :  { %v1717_v8 = vsub.f32 %v1713_v44, %v1716_v16 }
 0x9ba   :  { %v1718_v58 = vmul.f32 1.442695, %v1717_v8 }
 0x9bc   :  { %2353 = vpow2.f32 %v1718_v58 }
 0x9c6   :  { %v2354_v19 = vpop.eup %2353 }
 0x9c7   :  { %v1720_v11 = vsel %vm877_vm6, %v2354_v19, 0.0 }
 0x9c8   :  { %v1721_v10 = vsel %vm1287_vm13, %v1720_v11, 0.0 }
 0x9c9   :  { %1722 = vadd.xlane.f32.xlu0 %v1721_v10 }
 0xa12   :  { %v1297_v21 = vpop.xlane.xlu1 %1296 }
 0xa13   :  { %2355 = vrcp.f32 %v1297_v21 }
 0xa1d   :  { %v2356_v59 = vpop.eup %2355 }
 0xa1e   :  { %v1299_v23 = vmul.f32 %v2356_v59, %v1294_v54 }
 0xa20   :  { %2237 = vmatmul.mubr.msk.f32.vlgmr.msra.gmra.mrb[14].mxu0 %vm1287_vm13, %v1299_v23 }
 0xa21   :  { %2252 = vmatpush3.msra.mxu0 %v2960_v18  ;;  %2253 = vmatprep.mubr.msk.f32.mxu0 %vm3138_vm4, %v2375_v0  ;;  %v1858_v18 = vld [vmem:[%s3102_s11 + $0x8] sm:$0xff] }
 0xa22   :  { %2282 = vmatprep.subr.bf16.mxu0 %v2379_v62  ;;  %v2283_v29 = vpack.c.bf16 %v1858_v18, %v1857_v13 }
 0xa56   :  { %v1723_v17 = vpop.xlane.xlu0 %1722 }
 0xa57   :  { %2357 = vrcp.f32 %v1723_v17 }
 0xa61   :  { %v2358_v25 = vpop.eup %2357 }
 0xa62   :  { %v1725_v27 = vmul.f32 %v2358_v25, %v1720_v11 }
 0xa64   :  { %2254 = vmatmul.mubr.msk.f32.vlgmr.msra.gmra.mrb[20].mxu0 %vm1287_vm13, %v1725_v27 }
 0xa65   :  { %2264 = vmatprep.mubr.msk.f32.mxu0 %vm3138_vm4, %v2375_v0  ;;  %2284 = vmatpush3.bf16.msra.mxu0 %v2283_v29  ;;  %v1941_v29 = vld [vmem:[%s3103_s12] sm:$0xff] }
 0xa66   :  { %2285 = vmatprep.subr.bf16.mxu0 %v2379_v62 }
 0xa69   :  { %2287 = vmatpush3.bf16.msra.mxu0 %v2286_v31  ;;  %v2289_v31 = vpack.c.bf16 %v1942_v30, %v1941_v29 }
 0xa6a   :  { %2288 = vmatprep.subr.bf16.mxu0 %v2379_v62 }
 0xaf3   :  { %v1373_v32 = vpop.f32.mrb[14].mxu0 }
 0xaf4   :  { %v2238_v26 = vpop.f32.mrb[15].mxu0  ;;  %v1374_v38 = vadd.f32 %v1373_v32, %v1303_v22  ;;  %v1864_v32 = vrot.slane %v2483_v4, %v1021_v55 }
 0xaf6   :  { %v1803_v12 = vsel %vm3157_vm15, %v1374_v38, 0.0 }
 0xaf7   :  { %v1804_v44 = vrot.slane %v1803_v12, 4 }
 0xaf9   :  { %v1805_v20 = vadd.f32 %v1804_v44, %v1803_v12 }
 0xafb   :  { %v1806_v49 = vrot.slane %v1805_v20, 2 }
 0xafd   :  { %v1807_v14 = vadd.f32 %v1806_v49, %v1805_v20 }
 0xaff   :  { %v1808_v43 = vrot.slane %v1807_v14, 1 }
 0xb01   :  { %v1809_v15 = vadd.f32 %v1808_v43, %v1807_v14 }
 0xb03   :  { %v1811_v54 = vmul.f32 0.125, %v1809_v15 }
 0xb05   :  { %v1812_v7 = vsub.f32 %v1374_v38, %v1811_v54 }
 0xb07   :  { %v1813_v16 = vmul.f32 %v1812_v7, %v1812_v7 }
 0xb09   :  { %v1814_v8 = vsel %vm3158_vm8, %v1813_v16, 0.0 }
 0xb0a   :  { %v1815_v58 = vrot.slane %v1814_v8, 4 }
 0xb0c   :  { %v1816_v19 = vadd.f32 %v1815_v58, %v1814_v8 }
 0xb0e   :  { %v1817_v11 = vrot.slane %v1816_v19, 2 }
 0xb10   :  { %v1818_v10 = vadd.f32 %v1817_v11, %v1816_v19 }
 0xb12   :  { %v1819_v21 = vrot.slane %v1818_v10, 1 }
 0xb14   :  { %v1820_v57 = vadd.f32 %v1819_v21, %v1818_v10 }
 0xb16   :  { %v1821_v59 = vmul.f32 0.125, %v1820_v57 }
 0xb18   :  { %v1822_v23 = vadd.f32 1e-05, %v1821_v59 }
 0xb37   :  { %v1799_v34 = vpop.f32.mrb[20].mxu0 }
 0xb38   :  { %v1800_v24 = vadd.f32 %v1799_v34, %v1729_v33  ;;  %v2255_v37 = vpop.f32.mrb[21].mxu0 }
 0xb39   :  { %v1946_v37 = vrot.slane %v2483_v4, %v1026_v41 }
 0xb3a   :  { %v1828_v40 = vsel %vm3155_vm9, %v1800_v24, 0.0 }
 0xb3b   :  { %v1829_v42 = vrot.slane %v1828_v40, 4 }
 0xb3d   :  { %v1830_v45 = vadd.f32 %v1829_v42, %v1828_v40 }
 0xb3f   :  { %v1831_v47 = vrot.slane %v1830_v45, 2 }
 0xb41   :  { %v1832_v2 = vadd.f32 %v1831_v47, %v1830_v45 }
 0xb43   :  { %v1833_v3 = vrot.slane %v1832_v2, 1 }
 0xb45   :  { %v1834_v1 = vadd.f32 %v1833_v3, %v1832_v2 }
 0xb47   :  { %v1835_v5 = vmul.f32 0.125, %v1834_v1 }
 0xb49   :  { %v1836_v35 = vsub.f32 %v1800_v24, %v1835_v5 }
 0xb4b   :  { %v1837_v6 = vmul.f32 %v1836_v35, %v1836_v35 }
 0xb4d   :  { %v1838_v62 = vsel %vm3156_vm1, %v1837_v6, 0.0 }
 0xb4e   :  { %v1839_v48 = vrot.slane %v1838_v62, 4 }
 0xb50   :  { %v1840_v52 = vadd.f32 %v1839_v48, %v1838_v62 }
 0xb52   :  { %v1841_v60 = vrot.slane %v1840_v52, 2 }
 0xb54   :  { %v1842_v61 = vadd.f32 %v1841_v60, %v1840_v52 }
 0xb56   :  { %v1843_v63 = vrot.slane %v1842_v61, 1 }
 0xb58   :  { %v1844_v39 = vadd.f32 %v1843_v63, %v1842_v61 }
 0xb5a   :  { %v1845_v36 = vmul.f32 0.125, %v1844_v39 }
 0xb5c   :  { %v1846_v46 = vadd.f32 1e-05, %v1845_v36 }
 0xb5e   :  { %2359 = vrsqrt.f32 %v1846_v46 }
 0xb5f   :  { %2361 = vrsqrt.f32 %v1822_v23 }
 0xb68   :  { %v2360_v50 = vpop.eup %2359 }
 0xb69   :  { %v1848_v51 = vmul.f32 %v2360_v50, %v1836_v35  ;;  %v2362_v17 = vpop.eup %2361 }
 0xb6a   :  { %v1824_v25 = vmul.f32 %v2362_v17, %v1812_v7 }
 0xb6b   :  { %vm1849_vm11 = vcmp.gt.f32.partialorder %v1848_v51, 0.0  ;;  %v1850_v53 = vmul.f32 0.2, %v1848_v51 }
 0xb6c   :  { %v1826_v27 = vmul.f32 0.2, %v1824_v25  ;;  %vm1825_vm0 = vcmp.gt.f32.partialorder %v1824_v25, 0.0 }
 0xb6d   :  { %v1851_v9 = vsel %vm1849_vm11, %v1848_v51, %v1850_v53 }
 0xb6e   :  { %1853 = vrot.lane.b32.xlu1 %v1851_v9, %s2378_s21  ;;  %v1827_v13 = vsel %vm1825_vm0, %v1824_v25, %v1826_v27 }
 0xbe0   :  { %v1854_v18 = vpop.permute.xlu1 %1853 }
 0xbe1   :  { %v1856_v28 = vsel %vm3159_vm10, %v1827_v13, %v1854_v18 }
 0xbe2   :  { %2265 = vmatmul.mubr.msk.f32.vlgmr.msra.gmra.mrb[22].mxu0 %vm3160_vm2, %v1856_v28 }
 0xbe3   :  { %2271 = vmatprep.mubr.msk.f32.mxu0 %vm3138_vm4, %v2375_v0  ;;  %2290 = vmatpush3.bf16.msra.mxu0 %v2289_v31  ;;  %vm3161_vm4 = vmmov %vm3156_vm1 }
 0xcb5   :  { %v1934_v26 = vpop.f32.mrb[22].mxu0 }
 0xcb6   :  { %v1935_v33 = vadd.f32 %v1934_v26, %v1864_v32  ;;  %v2266_v34 = vpop.f32.mrb[23].mxu0 }
 0xcb8   :  { %vm1938_vm7 = vcmp.gt.f32.partialorder %v1935_v33, 0.0  ;;  %v1939_v24 = vmul.f32 0.2, %v1935_v33 }
 0xcba   :  { %v1940_v0 = vsel %vm1938_vm7, %v1935_v33, %v1939_v24 }
 0xcbb   :  { %2272 = vmatmul.mubr.msk.f32.vlgmr.msra.gmra.mrb[24].mxu0 %vm3161_vm4, %v1940_v0 }
 0xd8e   :  { %v2016_v40 = vpop.f32.mrb[24].mxu0 }
 0xd8f   :  { %v2017_v42 = vadd.f32 %v2016_v40, %v1946_v37  ;;  %v2273_v45 = vpop.f32.mrb[25].mxu0 }
 0xd91   :  { %v2022_v47 = vsel %vm2020_vm3, %v2017_v42, -inf  ;;  %2021 = vst.msk [vmem:[%s3104_s14] sm:$0xff] %vm2020_vm3, %v2017_v42 }
 0xd92   :  { %2023 = vmax.xlane.f32.xlu0 %v2022_v47 }
 0xe1f   :  { %v2024_v55 = vpop.xlane.xlu0 %2023 }
 0xe20   :  { %v2025_v2 = vsub.f32 %v2017_v42, %v2024_v55 }
 0xe22   :  { %v2026_v3 = vmul.f32 1.442695, %v2025_v2 }
 0xe24   :  { %2363 = vpow2.f32 %v2026_v3 }
 0xe2e   :  { %v2364_v1 = vpop.eup %2363 }
 0xe2f   :  { %v2028_v56 = vsel %vm2020_vm3, %v2364_v1, 0.0 }
 0xe30   :  { %2029 = vadd.xlane.f32.xlu0 %v2028_v56 }
 0xebd   :  { %v2030_v4 = vpop.xlane.xlu0 %2029 }
 0xebe   :  { %2365 = vrcp.f32 %v2030_v4 }
 0xec8   :  { %v2366_v41 = vpop.eup %2365 }
 0xec9   :  { %v2032_v5 = vmul.f32 %v2366_v41, %v2364_v1 }
 0xecb   :  { %2033 = vst.msk [vmem:[%s3105_s15] sm:$0xff] %vm2020_vm3, %v2032_v5 }

</bundles_post_ra>
